<compile_context>
chip_gen: v5e
topology: v5e:2x2
jax: 0.10.0
libtpu: 0.0.40
codegen_flags: <defaults>
</compile_context>

<pallas_src>
import math
import functools

import jax
import jax.numpy as jnp
from jax import lax
from jax.experimental import pallas as pl
from jax.experimental.pallas import tpu as pltpu

EPS_LN = 1e-12     # LayerNorm eps used everywhere in the module
EPS_NORM = 1e-12   # torch.nn.functional.normalize default eps


# ---------------------------------------------------------------------------
# in-kernel math helpers (all operate on 2D values)
# ---------------------------------------------------------------------------
def _gelu(x):
    # exact (erf-based) GELU, matching torch.nn.GELU() default
    return 0.5 * x * (1.0 + lax.erf(x * (1.0 / math.sqrt(2.0))))


def _sigmoid(x):
    return 1.0 / (1.0 + jnp.exp(-x))


def _silu(x):
    return x * _sigmoid(x)


def _softplus(x):
    return jnp.maximum(x, 0.0) + jnp.log(1.0 + jnp.exp(-jnp.abs(x)))


def _layer_norm(x, w_row, b_row, eps):
    # x: (L, H); w_row / b_row: (1, H)
    mean = jnp.mean(x, axis=-1, keepdims=True)
    var = jnp.mean((x - mean) ** 2, axis=-1, keepdims=True)
    return (x - mean) * lax.rsqrt(var + eps) * w_row + b_row


def _l2_normalize_lastdim(x, eps):
    n = jnp.sqrt(jnp.sum(x * x, axis=-1, keepdims=True))
    return x / jnp.maximum(n, eps)


# ---------------------------------------------------------------------------
# Fused kernel: MambaLayer -> EAAttention -> FeedForward, one batch element per grid step
# ---------------------------------------------------------------------------
def maeaa_kernel(
        # inputs
        x_ref,
        w_in_ref, conv_w_ref, conv_b_ref, w_xproj_ref, w_dt_ref, b_dt_ref,
        a_neg_ref, d_skip_ref, w_out_ref, mln_w_ref, mln_b_ref,
        wq_ref, bq_ref, wk_ref, bk_ref, wg_row_ref, wp_ref, bp_ref,
        lni_w_ref, lni_b_ref, wfl_ref, bfl_ref, lno_w_ref, lno_b_ref,
        w1_ref, b1_ref, w2_ref, b2_ref, fln_w_ref, fln_b_ref,
        # output
        o_ref,
        # scratch
        pad_ref, da_ref, dbu_ref, hist_ref,
        *, d_inner, d_state, d_conv, dt_rank, scale):
    x = x_ref[0]                                   # (L, H) float32
    L = x.shape[0]

    # ============================ MambaLayer ============================
    # in_proj (bias=False): weights pre-transposed -> (H, 2*d_inner)
    xz = jnp.dot(x, w_in_ref[...], preferred_element_type=jnp.float32)   # (L, 2*di)
    xc = xz[:, :d_inner]                           # conv branch
    z = xz[:, d_inner:]                            # gate branch

    # causal depthwise Conv1d (padding=d_conv-1, truncated to L) via zero-padded scratch
    if d_conv > 1:
        pad_ref[0:d_conv - 1, :] = jnp.zeros((d_conv - 1, d_inner), jnp.float32)
    pad_ref[d_conv - 1:d_conv - 1 + L, :] = xc
    cw = conv_w_ref[...]                           # (K, di)
    acc = pad_ref[0:L, :] * cw[0:1, :]
    for k in range(1, d_conv):                     # static, small (kernel width)
        acc = acc + pad_ref[k:k + L, :] * cw[k:k + 1, :]
    xconv = _silu(acc + conv_b_ref[...])           # (L, di)

    # x_proj (bias=False) -> dt / B / C ; dt_proj + softplus
    x_dbl = jnp.dot(xconv, w_xproj_ref[...], preferred_element_type=jnp.float32)
    delta = _softplus(jnp.dot(x_dbl[:, :dt_rank], w_dt_ref[...],
                              preferred_element_type=jnp.float32) + b_dt_ref[...])  # (L, di)
    Bm = x_dbl[:, dt_rank:dt_rank + d_state]                   # (L, ds)
    Cm = x_dbl[:, dt_rank + d_state:dt_rank + 2 * d_state]     # (L, ds)

    # Hoisted, vectorised-over-L scan coefficients, lane-blocked per state: column block
    # [s*di : (s+1)*di] holds dA_s = exp(delta * A[:, s]) and dBu_s = delta * u * B[:, s].
    a_neg = a_neg_ref[...]                         # (ds, di) = -exp(A_log).T (host-precomp)
    du = delta * xconv
    for s in range(d_state):                       # static, small
        lo, hi = s * d_inner, (s + 1) * d_inner
        da_ref[:, lo:hi] = jnp.exp(delta * a_neg[s:s + 1, :])
        dbu_ref[:, lo:hi] = du * Bm[:, s:s + 1]

    # Selective scan: the only thing on the serial dependence chain is one FMA per step.
    def scan_body(t, h):
        row = pl.ds(t, 1)
        h = da_ref[row, :] * h + dbu_ref[row, :]   # (1, ds*di)
        hist_ref[row, :] = h
        return h

    lax.fori_loop(0, L, scan_body,
                  jnp.zeros((1, d_state * d_inner), jnp.float32),
                  unroll=min(L, 8))

    # y[t] = sum_s C[t, s] * h_t[s, :]  +  D * u   (vectorised over L, off the serial path)
    hist = hist_ref[...]                           # (L, ds*di)
    y = d_skip_ref[...] * xconv
    for s in range(d_state):                       # static, small
        y = y + Cm[:, s:s + 1] * hist[:, s * d_inner:(s + 1) * d_inner]

    y = y * _silu(z)
    m_out = jnp.dot(y, w_out_ref[...], preferred_element_type=jnp.float32)  # (L, H)
    # dropout: identity ; residual + LayerNorm
    h1 = _layer_norm(m_out + x, mln_w_ref[...], mln_b_ref[...], EPS_LN)

    # ============================ EAAttention ============================
    q = jnp.dot(h1, wq_ref[...], preferred_element_type=jnp.float32) + bq_ref[...]
    k = jnp.dot(h1, wk_ref[...], preferred_element_type=jnp.float32) + bk_ref[...]
    q = _l2_normalize_lastdim(q, EPS_NORM)
    k = _l2_normalize_lastdim(k, EPS_NORM)
    q = _gelu(q)

    qw = jnp.sum(q * wg_row_ref[...], axis=-1, keepdims=True)    # query @ w_g -> (L, 1)
    A = qw * scale
    # F.normalize(A, dim=1): L2 over the sequence dim of this batch element
    A = A / jnp.maximum(jnp.sqrt(jnp.sum(A * A, axis=0, keepdims=True)), EPS_NORM)
    G = jnp.sum(A * q, axis=0, keepdims=True)      # (1, H), broadcast over L below

    hidden = jnp.dot(G * k, wp_ref[...], preferred_element_type=jnp.float32) + bp_ref[...]
    ln_in = _layer_norm(h1, lni_w_ref[...], lni_b_ref[...], EPS_LN)
    hidden = jnp.dot(hidden * ln_in, wfl_ref[...],
                     preferred_element_type=jnp.float32) + bfl_ref[...]
    # dropout: identity
    h2 = _layer_norm(hidden + h1, lno_w_ref[...], lno_b_ref[...], EPS_LN)

    # ============================ FeedForward ============================
    f = _gelu(jnp.dot(h2, w1_ref[...], preferred_element_type=jnp.float32) + b1_ref[...])
    f = jnp.dot(f, w2_ref[...], preferred_element_type=jnp.float32) + b2_ref[...]
    # dropout: identity
    o_ref[0] = _layer_norm(f + h2, fln_w_ref[...], fln_b_ref[...], EPS_LN)


# ---------------------------------------------------------------------------
# pallas_call wrapper: grid over batch (parallel), full (L, H) block per step
# ---------------------------------------------------------------------------
def ma_eaa_layer_forward(x, kparams, *, d_state, d_conv, expand):
    B, L, H = x.shape
    d_inner = expand * H
    dt_rank = math.ceil(H / 16)

    ordered = [
        kparams["w_in"], kparams["conv_w"], kparams["conv_b"], kparams["w_xproj"],
        kparams["w_dt"], kparams["b_dt"], kparams["a_neg"], kparams["d_skip"],
        kparams["w_out"], kparams["mln_w"], kparams["mln_b"],
        kparams["wq"], kparams["bq"], kparams["wk"], kparams["bk"], kparams["wg_row"],
        kparams["wp"], kparams["bp"], kparams["lni_w"], kparams["lni_b"],
        kparams["wfl"], kparams["bfl"], kparams["lno_w"], kparams["lno_b"],
        kparams["w1"], kparams["b1"], kparams["w2"], kparams["b2"],
        kparams["fln_w"], kparams["fln_b"],
    ]

    kernel = functools.partial(maeaa_kernel, d_inner=d_inner, d_state=d_state,
                               d_conv=d_conv, dt_rank=dt_rank, scale=H ** (-0.5))

    in_specs = [pl.BlockSpec((1, L, H), lambda b: (b, 0, 0))]
    for p in ordered:
        assert p.ndim == 2
        in_specs.append(pl.BlockSpec(p.shape, lambda b: (0, 0)))   # grid-invariant weights

    scratch = [
        pltpu.VMEM((L + d_conv - 1, d_inner), jnp.float32),        # zero-padded conv input
        pltpu.VMEM((L, d_state * d_inner), jnp.float32),           # dA  (lane-blocked by s)
        pltpu.VMEM((L, d_state * d_inner), jnp.float32),           # dBu (lane-blocked by s)
        pltpu.VMEM((L, d_state * d_inner), jnp.float32),           # h history
    ]

    return pl.pallas_call(
        kernel,
        out_shape=jax.ShapeDtypeStruct((B, L, H), jnp.float32),
        grid=(B,),
        in_specs=in_specs,
        out_specs=pl.BlockSpec((1, L, H), lambda b: (b, 0, 0)),
        scratch_shapes=scratch,
        compiler_params=pltpu.CompilerParams(dimension_semantics=("parallel",)),
    )(x, *ordered)


# ---------------------------------------------------------------------------
# deterministic synthetic parameters (PyTorch-native layouts) + host-side prep
# ---------------------------------------------------------------------------
def init_torch_style_params(key, H, d_state, d_conv, expand):
    """Parameters in the PyTorch module's native layouts (out_features, in_features)."""
    d_inner = expand * H
    dt_rank = math.ceil(H / 16)
    keys = jax.random.split(key, 20)
    s = 0.05
    rnd = lambda i, shape: jax.random.normal(keys[i], shape, jnp.float32) * s

    mamba = dict(
        in_proj_w=rnd(0, (2 * d_inner, H)),                 # Linear(H, 2*di, bias=False)
        conv1d_w=rnd(1, (d_inner, 1, d_conv)),              # Conv1d(di, di, K, groups=di)
        conv1d_b=rnd(2, (d_inner,)),
        x_proj_w=rnd(3, (dt_rank + 2 * d_state, d_inner)),  # Linear(di, dtr+2*ds, bias=False)
        dt_proj_w=rnd(4, (d_inner, dt_rank)),
        dt_proj_b=rnd(5, (d_inner,)),
        A_log=jnp.log(jnp.tile(jnp.arange(1, d_state + 1, dtype=jnp.float32)[None, :],
                               (d_inner, 1))),              # (di, ds), Mamba default init
        D=jnp.ones((d_inner,), jnp.float32),
        out_proj_w=rnd(6, (H, d_inner)),
        ln_w=jnp.ones((H,), jnp.float32), ln_b=jnp.zeros((H,), jnp.float32),
    )
    att = dict(
        to_query_w=rnd(7, (H, H)), to_query_b=rnd(8, (H,)),
        to_key_w=rnd(9, (H, H)), to_key_b=rnd(10, (H,)),
        w_g=jax.random.normal(keys[11], (H, 1), jnp.float32),
        proj_w=rnd(12, (H, H)), proj_b=rnd(13, (H,)),
        lnorm_w=jnp.ones((H,), jnp.float32), lnorm_b=jnp.zeros((H,), jnp.float32),
        fl_w=rnd(14, (H, H)), fl_b=rnd(15, (H,)),
        layernorm_w=jnp.ones((H,), jnp.float32), layernorm_b=jnp.zeros((H,), jnp.float32),
    )
    ff = dict(
        dense1_w=rnd(16, (4 * H, H)), dense1_b=rnd(17, (4 * H,)),
        dense2_w=rnd(18, (H, 4 * H)), dense2_b=rnd(19, (H,)),
        ln_w=jnp.ones((H,), jnp.float32), ln_b=jnp.zeros((H,), jnp.float32),
    )
    return dict(mamba=mamba, att=att, ff=ff)


def prepare_kernel_params(p):
    """One-time host-side layout prep: Linear weights transposed to (in, out), biases as
    (1, n) rows, conv weight as (K, d_inner), A = -exp(A_log) precomputed as (ds, di)."""
    m, a, f = p["mamba"], p["att"], p["ff"]
    row = lambda v: v.reshape(1, -1)
    return dict(
        w_in=m["in_proj_w"].T,
        conv_w=jnp.transpose(m["conv1d_w"][:, 0, :]),        # (K, d_inner)
        conv_b=row(m["conv1d_b"]),
        w_xproj=m["x_proj_w"].T,
        w_dt=m["dt_proj_w"].T,
        b_dt=row(m["dt_proj_b"]),
        a_neg=(-jnp.exp(m["A_log"])).T,                      # (d_state, d_inner)
        d_skip=row(m["D"]),
        w_out=m["out_proj_w"].T,
        mln_w=row(m["ln_w"]), mln_b=row(m["ln_b"]),
        wq=a["to_query_w"].T, bq=row(a["to_query_b"]),
        wk=a["to_key_w"].T, bk=row(a["to_key_b"]),
        wg_row=a["w_g"].T,                                   # (1, H)
        wp=a["proj_w"].T, bp=row(a["proj_b"]),
        lni_w=row(a["lnorm_w"]), lni_b=row(a["lnorm_b"]),
        wfl=a["fl_w"].T, bfl=row(a["fl_b"]),
        lno_w=row(a["layernorm_w"]), lno_b=row(a["layernorm_b"]),
        w1=f["dense1_w"].T, b1=row(f["dense1_b"]),
        w2=f["dense2_w"].T, b2=row(f["dense2_b"]),
        fln_w=row(f["ln_w"]), fln_b=row(f["ln_b"]),
    )


if __name__ == "__main__":
    B, L, H = 2, 8, 32
    d_state, d_conv, expand = 8, 4, 2

    key = jax.random.PRNGKey(0)
    kx, kp = jax.random.split(key)
    x = jax.random.normal(kx, (B, L, H), jnp.float32)
    params = prepare_kernel_params(init_torch_style_params(kp, H, d_state, d_conv, expand))

    out = ma_eaa_layer_forward(x, params, d_state=d_state, d_conv=d_conv, expand=expand)
    out = jax.block_until_ready(out)

    assert out.shape == (B, L, H), out.shape
    assert bool(jnp.all(jnp.isfinite(out)))
    print("KERNEL_OK")
</pallas_src>

<mosaic_0001>
module attributes {stable_mosaic.version = 11 : i64} {
  func.func @maeaa_kernel(%arg0: i32, %arg1: memref<1x8x32xf32, #tpu.memory_space<vmem>>, %arg2: memref<32x128xf32, #tpu.memory_space<vmem>>, %arg3: memref<4x64xf32, #tpu.memory_space<vmem>>, %arg4: memref<1x64xf32, #tpu.memory_space<vmem>>, %arg5: memref<64x18xf32, #tpu.memory_space<vmem>>, %arg6: memref<2x64xf32, #tpu.memory_space<vmem>>, %arg7: memref<1x64xf32, #tpu.memory_space<vmem>>, %arg8: memref<8x64xf32, #tpu.memory_space<vmem>>, %arg9: memref<1x64xf32, #tpu.memory_space<vmem>>, %arg10: memref<64x32xf32, #tpu.memory_space<vmem>>, %arg11: memref<1x32xf32, #tpu.memory_space<vmem>>, %arg12: memref<1x32xf32, #tpu.memory_space<vmem>>, %arg13: memref<32x32xf32, #tpu.memory_space<vmem>>, %arg14: memref<1x32xf32, #tpu.memory_space<vmem>>, %arg15: memref<32x32xf32, #tpu.memory_space<vmem>>, %arg16: memref<1x32xf32, #tpu.memory_space<vmem>>, %arg17: memref<1x32xf32, #tpu.memory_space<vmem>>, %arg18: memref<32x32xf32, #tpu.memory_space<vmem>>, %arg19: memref<1x32xf32, #tpu.memory_space<vmem>>, %arg20: memref<1x32xf32, #tpu.memory_space<vmem>>, %arg21: memref<1x32xf32, #tpu.memory_space<vmem>>, %arg22: memref<32x32xf32, #tpu.memory_space<vmem>>, %arg23: memref<1x32xf32, #tpu.memory_space<vmem>>, %arg24: memref<1x32xf32, #tpu.memory_space<vmem>>, %arg25: memref<1x32xf32, #tpu.memory_space<vmem>>, %arg26: memref<32x128xf32, #tpu.memory_space<vmem>>, %arg27: memref<1x128xf32, #tpu.memory_space<vmem>>, %arg28: memref<128x32xf32, #tpu.memory_space<vmem>>, %arg29: memref<1x32xf32, #tpu.memory_space<vmem>>, %arg30: memref<1x32xf32, #tpu.memory_space<vmem>>, %arg31: memref<1x32xf32, #tpu.memory_space<vmem>>, %arg32: memref<1x8x32xf32, #tpu.memory_space<vmem>>, %arg33: memref<11x64xf32, #tpu.memory_space<vmem>>, %arg34: memref<8x512xf32, #tpu.memory_space<vmem>>, %arg35: memref<8x512xf32, #tpu.memory_space<vmem>>, %arg36: memref<8x512xf32, #tpu.memory_space<vmem>>) attributes {dimension_semantics = [#tpu.dimension_semantics<parallel>], iteration_bounds = array<i64: 2>, scalar_prefetch = 0 : i64, scratch_operands = 4 : i64, tpu.core_type = #tpu.core_type<tc>, window_params = [{transform_indices = @transform_0, window_bounds = array<i64: 1, 8, 32>}, {pipeline_mode = #tpu.pipeline_mode<synchronous>, transform_indices = @transform_1, window_bounds = array<i64: 32, 128>}, {pipeline_mode = #tpu.pipeline_mode<synchronous>, transform_indices = @transform_2, window_bounds = array<i64: 4, 64>}, {pipeline_mode = #tpu.pipeline_mode<synchronous>, transform_indices = @transform_3, window_bounds = array<i64: 1, 64>}, {pipeline_mode = #tpu.pipeline_mode<synchronous>, transform_indices = @transform_4, window_bounds = array<i64: 64, 18>}, {pipeline_mode = #tpu.pipeline_mode<synchronous>, transform_indices = @transform_5, window_bounds = array<i64: 2, 64>}, {pipeline_mode = #tpu.pipeline_mode<synchronous>, transform_indices = @transform_6, window_bounds = array<i64: 1, 64>}, {pipeline_mode = #tpu.pipeline_mode<synchronous>, transform_indices = @transform_7, window_bounds = array<i64: 8, 64>}, {pipeline_mode = #tpu.pipeline_mode<synchronous>, transform_indices = @transform_8, window_bounds = array<i64: 1, 64>}, {pipeline_mode = #tpu.pipeline_mode<synchronous>, transform_indices = @transform_9, window_bounds = array<i64: 64, 32>}, {pipeline_mode = #tpu.pipeline_mode<synchronous>, transform_indices = @transform_10, window_bounds = array<i64: 1, 32>}, {pipeline_mode = #tpu.pipeline_mode<synchronous>, transform_indices = @transform_11, window_bounds = array<i64: 1, 32>}, {pipeline_mode = #tpu.pipeline_mode<synchronous>, transform_indices = @transform_12, window_bounds = array<i64: 32, 32>}, {pipeline_mode = #tpu.pipeline_mode<synchronous>, transform_indices = @transform_13, window_bounds = array<i64: 1, 32>}, {pipeline_mode = #tpu.pipeline_mode<synchronous>, transform_indices = @transform_14, window_bounds = array<i64: 32, 32>}, {pipeline_mode = #tpu.pipeline_mode<synchronous>, transform_indices = @transform_15, window_bounds = array<i64: 1, 32>}, {pipeline_mode = #tpu.pipeline_mode<synchronous>, transform_indices = @transform_16, window_bounds = array<i64: 1, 32>}, {pipeline_mode = #tpu.pipeline_mode<synchronous>, transform_indices = @transform_17, window_bounds = array<i64: 32, 32>}, {pipeline_mode = #tpu.pipeline_mode<synchronous>, transform_indices = @transform_18, window_bounds = array<i64: 1, 32>}, {pipeline_mode = #tpu.pipeline_mode<synchronous>, transform_indices = @transform_19, window_bounds = array<i64: 1, 32>}, {pipeline_mode = #tpu.pipeline_mode<synchronous>, transform_indices = @transform_20, window_bounds = array<i64: 1, 32>}, {pipeline_mode = #tpu.pipeline_mode<synchronous>, transform_indices = @transform_21, window_bounds = array<i64: 32, 32>}, {pipeline_mode = #tpu.pipeline_mode<synchronous>, transform_indices = @transform_22, window_bounds = array<i64: 1, 32>}, {pipeline_mode = #tpu.pipeline_mode<synchronous>, transform_indices = @transform_23, window_bounds = array<i64: 1, 32>}, {pipeline_mode = #tpu.pipeline_mode<synchronous>, transform_indices = @transform_24, window_bounds = array<i64: 1, 32>}, {pipeline_mode = #tpu.pipeline_mode<synchronous>, transform_indices = @transform_25, window_bounds = array<i64: 32, 128>}, {pipeline_mode = #tpu.pipeline_mode<synchronous>, transform_indices = @transform_26, window_bounds = array<i64: 1, 128>}, {pipeline_mode = #tpu.pipeline_mode<synchronous>, transform_indices = @transform_27, window_bounds = array<i64: 128, 32>}, {pipeline_mode = #tpu.pipeline_mode<synchronous>, transform_indices = @transform_28, window_bounds = array<i64: 1, 32>}, {pipeline_mode = #tpu.pipeline_mode<synchronous>, transform_indices = @transform_29, window_bounds = array<i64: 1, 32>}, {pipeline_mode = #tpu.pipeline_mode<synchronous>, transform_indices = @transform_30, window_bounds = array<i64: 1, 32>}, {transform_indices = @transform_31, window_bounds = array<i64: 1, 8, 32>}]} {
    %c0 = arith.constant 0 : index
    %c0_0 = arith.constant 0 : index
    %c0_1 = arith.constant 0 : index
    %0 = vector.load %arg1[%c0, %c0_0, %c0_1] : memref<1x8x32xf32, #tpu.memory_space<vmem>>, vector<1x8x32xf32>
    %1 = vector.shape_cast %0 : vector<1x8x32xf32> to vector<8x32xf32>
    %c0_2 = arith.constant 0 : index
    %c0_3 = arith.constant 0 : index
    %2 = vector.load %arg2[%c0_2, %c0_3] : memref<32x128xf32, #tpu.memory_space<vmem>>, vector<32x128xf32>
    %cst = arith.constant dense<0.000000e+00> : vector<8x128xf32>
    %3 = tpu.matmul %1, %2, %cst {dimension_numbers = #tpu.dot_dimension_numbers<[1], [0], [0], [1], [0, 0, 1, 1], [], []>} : vector<8x32xf32>, vector<32x128xf32>, vector<8x128xf32> -> vector<8x128xf32>
    %4 = vector.extract_strided_slice %3 {offsets = [0, 0], sizes = [8, 64], strides = [1, 1]} : vector<8x128xf32> to vector<8x64xf32>
    %5 = vector.extract_strided_slice %3 {offsets = [0, 64], sizes = [8, 64], strides = [1, 1]} : vector<8x128xf32> to vector<8x64xf32>
    %cst_4 = arith.constant 0.000000e+00 : f32
    %6 = vector.broadcast %cst_4 : f32 to vector<3x64xf32>
    %c0_5 = arith.constant 0 : index
    %c0_6 = arith.constant 0 : index
    %7 = vector.load %arg33[%c0_5, %c0_6] : memref<11x64xf32, #tpu.memory_space<vmem>>, vector<3x64xf32>
    tpu.vector_store %arg33[%c0_5, %c0_6], %6 {strides = array<i32>} : memref<11x64xf32, #tpu.memory_space<vmem>>, vector<3x64xf32>,
    %c3 = arith.constant 3 : index
    %c0_7 = arith.constant 0 : index
    %8 = vector.load %arg33[%c3, %c0_7] : memref<11x64xf32, #tpu.memory_space<vmem>>, vector<8x64xf32>
    tpu.vector_store %arg33[%c3, %c0_7], %4 {strides = array<i32>} : memref<11x64xf32, #tpu.memory_space<vmem>>, vector<8x64xf32>,
    %c0_8 = arith.constant 0 : index
    %c0_9 = arith.constant 0 : index
    %9 = vector.load %arg3[%c0_8, %c0_9] : memref<4x64xf32, #tpu.memory_space<vmem>>, vector<4x64xf32>
    %c0_10 = arith.constant 0 : index
    %c0_11 = arith.constant 0 : index
    %10 = vector.load %arg33[%c0_10, %c0_11] : memref<11x64xf32, #tpu.memory_space<vmem>>, vector<8x64xf32>
    %11 = vector.extract_strided_slice %9 {offsets = [0, 0], sizes = [1, 64], strides = [1, 1]} : vector<4x64xf32> to vector<1x64xf32>
    %12 = vector.broadcast %11 : vector<1x64xf32> to vector<8x64xf32>
    %13 = arith.mulf %10, %12 : vector<8x64xf32>
    %c1 = arith.constant 1 : index
    %c0_12 = arith.constant 0 : index
    %14 = vector.load %arg33[%c1, %c0_12] : memref<11x64xf32, #tpu.memory_space<vmem>>, vector<8x64xf32>
    %15 = vector.extract_strided_slice %9 {offsets = [1, 0], sizes = [1, 64], strides = [1, 1]} : vector<4x64xf32> to vector<1x64xf32>
    %16 = vector.broadcast %15 : vector<1x64xf32> to vector<8x64xf32>
    %17 = arith.mulf %14, %16 : vector<8x64xf32>
    %18 = arith.addf %13, %17 : vector<8x64xf32>
    %c2 = arith.constant 2 : index
    %c0_13 = arith.constant 0 : index
    %19 = vector.load %arg33[%c2, %c0_13] : memref<11x64xf32, #tpu.memory_space<vmem>>, vector<8x64xf32>
    %20 = vector.extract_strided_slice %9 {offsets = [2, 0], sizes = [1, 64], strides = [1, 1]} : vector<4x64xf32> to vector<1x64xf32>
    %21 = vector.broadcast %20 : vector<1x64xf32> to vector<8x64xf32>
    %22 = arith.mulf %19, %21 : vector<8x64xf32>
    %23 = arith.addf %18, %22 : vector<8x64xf32>
    %c3_14 = arith.constant 3 : index
    %c0_15 = arith.constant 0 : index
    %24 = vector.load %arg33[%c3_14, %c0_15] : memref<11x64xf32, #tpu.memory_space<vmem>>, vector<8x64xf32>
    %25 = vector.extract_strided_slice %9 {offsets = [3, 0], sizes = [1, 64], strides = [1, 1]} : vector<4x64xf32> to vector<1x64xf32>
    %26 = vector.broadcast %25 : vector<1x64xf32> to vector<8x64xf32>
    %27 = arith.mulf %24, %26 : vector<8x64xf32>
    %28 = arith.addf %23, %27 : vector<8x64xf32>
    %c0_16 = arith.constant 0 : index
    %c0_17 = arith.constant 0 : index
    %29 = vector.load %arg4[%c0_16, %c0_17] : memref<1x64xf32, #tpu.memory_space<vmem>>, vector<1x64xf32>
    %30 = vector.broadcast %29 : vector<1x64xf32> to vector<8x64xf32>
    %31 = arith.addf %28, %30 : vector<8x64xf32>
    %cst_18 = arith.constant 0.000000e+00 : f32
    %32 = vector.broadcast %cst_18 : f32 to vector<8x64xf32>
    %33 = arith.subf %32, %31 : vector<8x64xf32>
    %34 = math.exp %33 : vector<8x64xf32>
    %cst_19 = arith.constant 1.000000e+00 : f32
    %35 = vector.broadcast %cst_19 : f32 to vector<8x64xf32>
    %36 = arith.addf %35, %34 : vector<8x64xf32>
    %cst_20 = arith.constant 1.000000e+00 : f32
    %37 = vector.broadcast %cst_20 : f32 to vector<8x64xf32>
    %38 = arith.divf %37, %36 : vector<8x64xf32>
    %39 = arith.mulf %31, %38 : vector<8x64xf32>
    %c0_21 = arith.constant 0 : index
    %c0_22 = arith.constant 0 : index
    %40 = vector.load %arg5[%c0_21, %c0_22] : memref<64x18xf32, #tpu.memory_space<vmem>>, vector<64x18xf32>
    %cst_23 = arith.constant dense<0.000000e+00> : vector<8x18xf32>
    %41 = tpu.matmul %39, %40, %cst_23 {dimension_numbers = #tpu.dot_dimension_numbers<[1], [0], [0], [1], [0, 0, 1, 1], [], []>} : vector<8x64xf32>, vector<64x18xf32>, vector<8x18xf32> -> vector<8x18xf32>
    %42 = vector.extract_strided_slice %41 {offsets = [0, 0], sizes = [8, 2], strides = [1, 1]} : vector<8x18xf32> to vector<8x2xf32>
    %c0_24 = arith.constant 0 : index
    %c0_25 = arith.constant 0 : index
    %43 = vector.load %arg6[%c0_24, %c0_25] : memref<2x64xf32, #tpu.memory_space<vmem>>, vector<2x64xf32>
    %cst_26 = arith.constant dense<0.000000e+00> : vector<8x64xf32>
    %44 = tpu.matmul %42, %43, %cst_26 {dimension_numbers = #tpu.dot_dimension_numbers<[1], [0], [0], [1], [0, 0, 1, 1], [], []>} : vector<8x2xf32>, vector<2x64xf32>, vector<8x64xf32> -> vector<8x64xf32>
    %c0_27 = arith.constant 0 : index
    %c0_28 = arith.constant 0 : index
    %45 = vector.load %arg7[%c0_27, %c0_28] : memref<1x64xf32, #tpu.memory_space<vmem>>, vector<1x64xf32>
    %46 = vector.broadcast %45 : vector<1x64xf32> to vector<8x64xf32>
    %47 = arith.addf %44, %46 : vector<8x64xf32>
    %cst_29 = arith.constant 0.000000e+00 : f32
    %48 = vector.broadcast %cst_29 : f32 to vector<8x64xf32>
    %49 = arith.maximumf %47, %48 : vector<8x64xf32>
    %50 = math.absf %47 : vector<8x64xf32>
    %cst_30 = arith.constant 0.000000e+00 : f32
    %51 = vector.broadcast %cst_30 : f32 to vector<8x64xf32>
    %52 = arith.subf %51, %50 : vector<8x64xf32>
    %53 = math.exp %52 : vector<8x64xf32>
    %cst_31 = arith.constant 1.000000e+00 : f32
    %54 = vector.broadcast %cst_31 : f32 to vector<8x64xf32>
    %55 = arith.addf %54, %53 : vector<8x64xf32>
    %56 = math.log %55 : vector<8x64xf32>
    %57 = arith.addf %49, %56 : vector<8x64xf32>
    %58 = vector.extract_strided_slice %41 {offsets = [0, 2], sizes = [8, 8], strides = [1, 1]} : vector<8x18xf32> to vector<8x8xf32>
    %59 = vector.extract_strided_slice %41 {offsets = [0, 10], sizes = [8, 8], strides = [1, 1]} : vector<8x18xf32> to vector<8x8xf32>
    %c0_32 = arith.constant 0 : index
    %c0_33 = arith.constant 0 : index
    %60 = vector.load %arg8[%c0_32, %c0_33] : memref<8x64xf32, #tpu.memory_space<vmem>>, vector<8x64xf32>
    %61 = arith.mulf %57, %39 : vector<8x64xf32>
    %62 = vector.extract_strided_slice %60 {offsets = [0, 0], sizes = [1, 64], strides = [1, 1]} : vector<8x64xf32> to vector<1x64xf32>
    %63 = vector.broadcast %62 : vector<1x64xf32> to vector<8x64xf32>
    %64 = arith.mulf %57, %63 : vector<8x64xf32>
    %65 = math.exp %64 : vector<8x64xf32>
    %c0_34 = arith.constant 0 : index
    %c0_35 = arith.constant 0 : index
    %66 = vector.load %arg34[%c0_34, %c0_35] : memref<8x512xf32, #tpu.memory_space<vmem>>, vector<8x64xf32>
    tpu.vector_store %arg34[%c0_34, %c0_35], %65 {strides = array<i32>} : memref<8x512xf32, #tpu.memory_space<vmem>>, vector<8x64xf32>,
    %67 = vector.extract_strided_slice %58 {offsets = [0, 0], sizes = [8, 1], strides = [1, 1]} : vector<8x8xf32> to vector<8x1xf32>
    %68 = vector.broadcast %67 : vector<8x1xf32> to vector<8x64xf32>
    %69 = arith.mulf %61, %68 : vector<8x64xf32>
    %c0_36 = arith.constant 0 : index
    %c0_37 = arith.constant 0 : index
    %70 = vector.load %arg35[%c0_36, %c0_37] : memref<8x512xf32, #tpu.memory_space<vmem>>, vector<8x64xf32>
    tpu.vector_store %arg35[%c0_36, %c0_37], %69 {strides = array<i32>} : memref<8x512xf32, #tpu.memory_space<vmem>>, vector<8x64xf32>,
    %71 = vector.extract_strided_slice %60 {offsets = [1, 0], sizes = [1, 64], strides = [1, 1]} : vector<8x64xf32> to vector<1x64xf32>
    %72 = vector.broadcast %71 : vector<1x64xf32> to vector<8x64xf32>
    %73 = arith.mulf %57, %72 : vector<8x64xf32>
    %74 = math.exp %73 : vector<8x64xf32>
    %c0_38 = arith.constant 0 : index
    %c64 = arith.constant 64 : index
    %75 = vector.load %arg34[%c0_38, %c64] : memref<8x512xf32, #tpu.memory_space<vmem>>, vector<8x64xf32>
    tpu.vector_store %arg34[%c0_38, %c64], %74 {strides = array<i32>} : memref<8x512xf32, #tpu.memory_space<vmem>>, vector<8x64xf32>,
    %76 = vector.extract_strided_slice %58 {offsets = [0, 1], sizes = [8, 1], strides = [1, 1]} : vector<8x8xf32> to vector<8x1xf32>
    %77 = vector.broadcast %76 : vector<8x1xf32> to vector<8x64xf32>
    %78 = arith.mulf %61, %77 : vector<8x64xf32>
    %c0_39 = arith.constant 0 : index
    %c64_40 = arith.constant 64 : index
    %79 = vector.load %arg35[%c0_39, %c64_40] : memref<8x512xf32, #tpu.memory_space<vmem>>, vector<8x64xf32>
    tpu.vector_store %arg35[%c0_39, %c64_40], %78 {strides = array<i32>} : memref<8x512xf32, #tpu.memory_space<vmem>>, vector<8x64xf32>,
    %80 = vector.extract_strided_slice %60 {offsets = [2, 0], sizes = [1, 64], strides = [1, 1]} : vector<8x64xf32> to vector<1x64xf32>
    %81 = vector.broadcast %80 : vector<1x64xf32> to vector<8x64xf32>
    %82 = arith.mulf %57, %81 : vector<8x64xf32>
    %83 = math.exp %82 : vector<8x64xf32>
    %c0_41 = arith.constant 0 : index
    %c128 = arith.constant 128 : index
    %84 = vector.load %arg34[%c0_41, %c128] : memref<8x512xf32, #tpu.memory_space<vmem>>, vector<8x64xf32>
    tpu.vector_store %arg34[%c0_41, %c128], %83 {strides = array<i32>} : memref<8x512xf32, #tpu.memory_space<vmem>>, vector<8x64xf32>,
    %85 = vector.extract_strided_slice %58 {offsets = [0, 2], sizes = [8, 1], strides = [1, 1]} : vector<8x8xf32> to vector<8x1xf32>
    %86 = vector.broadcast %85 : vector<8x1xf32> to vector<8x64xf32>
    %87 = arith.mulf %61, %86 : vector<8x64xf32>
    %c0_42 = arith.constant 0 : index
    %c128_43 = arith.constant 128 : index
    %88 = vector.load %arg35[%c0_42, %c128_43] : memref<8x512xf32, #tpu.memory_space<vmem>>, vector<8x64xf32>
    tpu.vector_store %arg35[%c0_42, %c128_43], %87 {strides = array<i32>} : memref<8x512xf32, #tpu.memory_space<vmem>>, vector<8x64xf32>,
    %89 = vector.extract_strided_slice %60 {offsets = [3, 0], sizes = [1, 64], strides = [1, 1]} : vector<8x64xf32> to vector<1x64xf32>
    %90 = vector.broadcast %89 : vector<1x64xf32> to vector<8x64xf32>
    %91 = arith.mulf %57, %90 : vector<8x64xf32>
    %92 = math.exp %91 : vector<8x64xf32>
    %c0_44 = arith.constant 0 : index
    %c192 = arith.constant 192 : index
    %93 = vector.load %arg34[%c0_44, %c192] : memref<8x512xf32, #tpu.memory_space<vmem>>, vector<8x64xf32>
    tpu.vector_store %arg34[%c0_44, %c192], %92 {strides = array<i32>} : memref<8x512xf32, #tpu.memory_space<vmem>>, vector<8x64xf32>,
    %94 = vector.extract_strided_slice %58 {offsets = [0, 3], sizes = [8, 1], strides = [1, 1]} : vector<8x8xf32> to vector<8x1xf32>
    %95 = vector.broadcast %94 : vector<8x1xf32> to vector<8x64xf32>
    %96 = arith.mulf %61, %95 : vector<8x64xf32>
    %c0_45 = arith.constant 0 : index
    %c192_46 = arith.constant 192 : index
    %97 = vector.load %arg35[%c0_45, %c192_46] : memref<8x512xf32, #tpu.memory_space<vmem>>, vector<8x64xf32>
    tpu.vector_store %arg35[%c0_45, %c192_46], %96 {strides = array<i32>} : memref<8x512xf32, #tpu.memory_space<vmem>>, vector<8x64xf32>,
    %98 = vector.extract_strided_slice %60 {offsets = [4, 0], sizes = [1, 64], strides = [1, 1]} : vector<8x64xf32> to vector<1x64xf32>
    %99 = vector.broadcast %98 : vector<1x64xf32> to vector<8x64xf32>
    %100 = arith.mulf %57, %99 : vector<8x64xf32>
    %101 = math.exp %100 : vector<8x64xf32>
    %c0_47 = arith.constant 0 : index
    %c256 = arith.constant 256 : index
    %102 = vector.load %arg34[%c0_47, %c256] : memref<8x512xf32, #tpu.memory_space<vmem>>, vector<8x64xf32>
    tpu.vector_store %arg34[%c0_47, %c256], %101 {strides = array<i32>} : memref<8x512xf32, #tpu.memory_space<vmem>>, vector<8x64xf32>,
    %103 = vector.extract_strided_slice %58 {offsets = [0, 4], sizes = [8, 1], strides = [1, 1]} : vector<8x8xf32> to vector<8x1xf32>
    %104 = vector.broadcast %103 : vector<8x1xf32> to vector<8x64xf32>
    %105 = arith.mulf %61, %104 : vector<8x64xf32>
    %c0_48 = arith.constant 0 : index
    %c256_49 = arith.constant 256 : index
    %106 = vector.load %arg35[%c0_48, %c256_49] : memref<8x512xf32, #tpu.memory_space<vmem>>, vector<8x64xf32>
    tpu.vector_store %arg35[%c0_48, %c256_49], %105 {strides = array<i32>} : memref<8x512xf32, #tpu.memory_space<vmem>>, vector<8x64xf32>,
    %107 = vector.extract_strided_slice %60 {offsets = [5, 0], sizes = [1, 64], strides = [1, 1]} : vector<8x64xf32> to vector<1x64xf32>
    %108 = vector.broadcast %107 : vector<1x64xf32> to vector<8x64xf32>
    %109 = arith.mulf %57, %108 : vector<8x64xf32>
    %110 = math.exp %109 : vector<8x64xf32>
    %c0_50 = arith.constant 0 : index
    %c320 = arith.constant 320 : index
    %111 = vector.load %arg34[%c0_50, %c320] : memref<8x512xf32, #tpu.memory_space<vmem>>, vector<8x64xf32>
    tpu.vector_store %arg34[%c0_50, %c320], %110 {strides = array<i32>} : memref<8x512xf32, #tpu.memory_space<vmem>>, vector<8x64xf32>,
    %112 = vector.extract_strided_slice %58 {offsets = [0, 5], sizes = [8, 1], strides = [1, 1]} : vector<8x8xf32> to vector<8x1xf32>
    %113 = vector.broadcast %112 : vector<8x1xf32> to vector<8x64xf32>
    %114 = arith.mulf %61, %113 : vector<8x64xf32>
    %c0_51 = arith.constant 0 : index
    %c320_52 = arith.constant 320 : index
    %115 = vector.load %arg35[%c0_51, %c320_52] : memref<8x512xf32, #tpu.memory_space<vmem>>, vector<8x64xf32>
    tpu.vector_store %arg35[%c0_51, %c320_52], %114 {strides = array<i32>} : memref<8x512xf32, #tpu.memory_space<vmem>>, vector<8x64xf32>,
    %116 = vector.extract_strided_slice %60 {offsets = [6, 0], sizes = [1, 64], strides = [1, 1]} : vector<8x64xf32> to vector<1x64xf32>
    %117 = vector.broadcast %116 : vector<1x64xf32> to vector<8x64xf32>
    %118 = arith.mulf %57, %117 : vector<8x64xf32>
    %119 = math.exp %118 : vector<8x64xf32>
    %c0_53 = arith.constant 0 : index
    %c384 = arith.constant 384 : index
    %120 = vector.load %arg34[%c0_53, %c384] : memref<8x512xf32, #tpu.memory_space<vmem>>, vector<8x64xf32>
    tpu.vector_store %arg34[%c0_53, %c384], %119 {strides = array<i32>} : memref<8x512xf32, #tpu.memory_space<vmem>>, vector<8x64xf32>,
    %121 = vector.extract_strided_slice %58 {offsets = [0, 6], sizes = [8, 1], strides = [1, 1]} : vector<8x8xf32> to vector<8x1xf32>
    %122 = vector.broadcast %121 : vector<8x1xf32> to vector<8x64xf32>
    %123 = arith.mulf %61, %122 : vector<8x64xf32>
    %c0_54 = arith.constant 0 : index
    %c384_55 = arith.constant 384 : index
    %124 = vector.load %arg35[%c0_54, %c384_55] : memref<8x512xf32, #tpu.memory_space<vmem>>, vector<8x64xf32>
    tpu.vector_store %arg35[%c0_54, %c384_55], %123 {strides = array<i32>} : memref<8x512xf32, #tpu.memory_space<vmem>>, vector<8x64xf32>,
    %125 = vector.extract_strided_slice %60 {offsets = [7, 0], sizes = [1, 64], strides = [1, 1]} : vector<8x64xf32> to vector<1x64xf32>
    %126 = vector.broadcast %125 : vector<1x64xf32> to vector<8x64xf32>
    %127 = arith.mulf %57, %126 : vector<8x64xf32>
    %128 = math.exp %127 : vector<8x64xf32>
    %c0_56 = arith.constant 0 : index
    %c448 = arith.constant 448 : index
    %129 = vector.load %arg34[%c0_56, %c448] : memref<8x512xf32, #tpu.memory_space<vmem>>, vector<8x64xf32>
    tpu.vector_store %arg34[%c0_56, %c448], %128 {strides = array<i32>} : memref<8x512xf32, #tpu.memory_space<vmem>>, vector<8x64xf32>,
    %130 = vector.extract_strided_slice %58 {offsets = [0, 7], sizes = [8, 1], strides = [1, 1]} : vector<8x8xf32> to vector<8x1xf32>
    %131 = vector.broadcast %130 : vector<8x1xf32> to vector<8x64xf32>
    %132 = arith.mulf %61, %131 : vector<8x64xf32>
    %c0_57 = arith.constant 0 : index
    %c448_58 = arith.constant 448 : index
    %133 = vector.load %arg35[%c0_57, %c448_58] : memref<8x512xf32, #tpu.memory_space<vmem>>, vector<8x64xf32>
    tpu.vector_store %arg35[%c0_57, %c448_58], %132 {strides = array<i32>} : memref<8x512xf32, #tpu.memory_space<vmem>>, vector<8x64xf32>,
    %cst_59 = arith.constant 0.000000e+00 : f32
    %134 = vector.broadcast %cst_59 : f32 to vector<1x512xf32>
    %c0_i32 = arith.constant 0 : i32
    %135 = arith.index_cast %c0_i32 : i32 to index
    %c0_60 = arith.constant 0 : index
    %136 = vector.load %arg34[%135, %c0_60] : memref<8x512xf32, #tpu.memory_space<vmem>>, vector<1x512xf32>
    %137 = arith.mulf %136, %134 : vector<1x512xf32>
    %138 = arith.index_cast %c0_i32 : i32 to index
    %c0_61 = arith.constant 0 : index
    %139 = vector.load %arg35[%138, %c0_61] : memref<8x512xf32, #tpu.memory_space<vmem>>, vector<1x512xf32>
    %140 = arith.addf %137, %139 : vector<1x512xf32>
    %141 = arith.index_cast %c0_i32 : i32 to index
    %c0_62 = arith.constant 0 : index
    %142 = vector.load %arg36[%141, %c0_62] : memref<8x512xf32, #tpu.memory_space<vmem>>, vector<1x512xf32>
    tpu.vector_store %arg36[%141, %c0_62], %140 {strides = array<i32>} : memref<8x512xf32, #tpu.memory_space<vmem>>, vector<1x512xf32>,
    %c1_i32 = arith.constant 1 : i32
    %143 = arith.index_cast %c1_i32 : i32 to index
    %c0_63 = arith.constant 0 : index
    %144 = vector.load %arg34[%143, %c0_63] : memref<8x512xf32, #tpu.memory_space<vmem>>, vector<1x512xf32>
    %145 = arith.mulf %144, %140 : vector<1x512xf32>
    %146 = arith.index_cast %c1_i32 : i32 to index
    %c0_64 = arith.constant 0 : index
    %147 = vector.load %arg35[%146, %c0_64] : memref<8x512xf32, #tpu.memory_space<vmem>>, vector<1x512xf32>
    %148 = arith.addf %145, %147 : vector<1x512xf32>
    %149 = arith.index_cast %c1_i32 : i32 to index
    %c0_65 = arith.constant 0 : index
    %150 = vector.load %arg36[%149, %c0_65] : memref<8x512xf32, #tpu.memory_space<vmem>>, vector<1x512xf32>
    tpu.vector_store %arg36[%149, %c0_65], %148 {strides = array<i32>} : memref<8x512xf32, #tpu.memory_space<vmem>>, vector<1x512xf32>,
    %c2_i32 = arith.constant 2 : i32
    %151 = arith.index_cast %c2_i32 : i32 to index
    %c0_66 = arith.constant 0 : index
    %152 = vector.load %arg34[%151, %c0_66] : memref<8x512xf32, #tpu.memory_space<vmem>>, vector<1x512xf32>
    %153 = arith.mulf %152, %148 : vector<1x512xf32>
    %154 = arith.index_cast %c2_i32 : i32 to index
    %c0_67 = arith.constant 0 : index
    %155 = vector.load %arg35[%154, %c0_67] : memref<8x512xf32, #tpu.memory_space<vmem>>, vector<1x512xf32>
    %156 = arith.addf %153, %155 : vector<1x512xf32>
    %157 = arith.index_cast %c2_i32 : i32 to index
    %c0_68 = arith.constant 0 : index
    %158 = vector.load %arg36[%157, %c0_68] : memref<8x512xf32, #tpu.memory_space<vmem>>, vector<1x512xf32>
    tpu.vector_store %arg36[%157, %c0_68], %156 {strides = array<i32>} : memref<8x512xf32, #tpu.memory_space<vmem>>, vector<1x512xf32>,
    %c3_i32 = arith.constant 3 : i32
    %159 = arith.index_cast %c3_i32 : i32 to index
    %c0_69 = arith.constant 0 : index
    %160 = vector.load %arg34[%159, %c0_69] : memref<8x512xf32, #tpu.memory_space<vmem>>, vector<1x512xf32>
    %161 = arith.mulf %160, %156 : vector<1x512xf32>
    %162 = arith.index_cast %c3_i32 : i32 to index
    %c0_70 = arith.constant 0 : index
    %163 = vector.load %arg35[%162, %c0_70] : memref<8x512xf32, #tpu.memory_space<vmem>>, vector<1x512xf32>
    %164 = arith.addf %161, %163 : vector<1x512xf32>
    %165 = arith.index_cast %c3_i32 : i32 to index
    %c0_71 = arith.constant 0 : index
    %166 = vector.load %arg36[%165, %c0_71] : memref<8x512xf32, #tpu.memory_space<vmem>>, vector<1x512xf32>
    tpu.vector_store %arg36[%165, %c0_71], %164 {strides = array<i32>} : memref<8x512xf32, #tpu.memory_space<vmem>>, vector<1x512xf32>,
    %c4_i32 = arith.constant 4 : i32
    %167 = arith.index_cast %c4_i32 : i32 to index
    %c0_72 = arith.constant 0 : index
    %168 = vector.load %arg34[%167, %c0_72] : memref<8x512xf32, #tpu.memory_space<vmem>>, vector<1x512xf32>
    %169 = arith.mulf %168, %164 : vector<1x512xf32>
    %170 = arith.index_cast %c4_i32 : i32 to index
    %c0_73 = arith.constant 0 : index
    %171 = vector.load %arg35[%170, %c0_73] : memref<8x512xf32, #tpu.memory_space<vmem>>, vector<1x512xf32>
    %172 = arith.addf %169, %171 : vector<1x512xf32>
    %173 = arith.index_cast %c4_i32 : i32 to index
    %c0_74 = arith.constant 0 : index
    %174 = vector.load %arg36[%173, %c0_74] : memref<8x512xf32, #tpu.memory_space<vmem>>, vector<1x512xf32>
    tpu.vector_store %arg36[%173, %c0_74], %172 {strides = array<i32>} : memref<8x512xf32, #tpu.memory_space<vmem>>, vector<1x512xf32>,
    %c5_i32 = arith.constant 5 : i32
    %175 = arith.index_cast %c5_i32 : i32 to index
    %c0_75 = arith.constant 0 : index
    %176 = vector.load %arg34[%175, %c0_75] : memref<8x512xf32, #tpu.memory_space<vmem>>, vector<1x512xf32>
    %177 = arith.mulf %176, %172 : vector<1x512xf32>
    %178 = arith.index_cast %c5_i32 : i32 to index
    %c0_76 = arith.constant 0 : index
    %179 = vector.load %arg35[%178, %c0_76] : memref<8x512xf32, #tpu.memory_space<vmem>>, vector<1x512xf32>
    %180 = arith.addf %177, %179 : vector<1x512xf32>
    %181 = arith.index_cast %c5_i32 : i32 to index
    %c0_77 = arith.constant 0 : index
    %182 = vector.load %arg36[%181, %c0_77] : memref<8x512xf32, #tpu.memory_space<vmem>>, vector<1x512xf32>
    tpu.vector_store %arg36[%181, %c0_77], %180 {strides = array<i32>} : memref<8x512xf32, #tpu.memory_space<vmem>>, vector<1x512xf32>,
    %c6_i32 = arith.constant 6 : i32
    %183 = arith.index_cast %c6_i32 : i32 to index
    %c0_78 = arith.constant 0 : index
    %184 = vector.load %arg34[%183, %c0_78] : memref<8x512xf32, #tpu.memory_space<vmem>>, vector<1x512xf32>
    %185 = arith.mulf %184, %180 : vector<1x512xf32>
    %186 = arith.index_cast %c6_i32 : i32 to index
    %c0_79 = arith.constant 0 : index
    %187 = vector.load %arg35[%186, %c0_79] : memref<8x512xf32, #tpu.memory_space<vmem>>, vector<1x512xf32>
    %188 = arith.addf %185, %187 : vector<1x512xf32>
    %189 = arith.index_cast %c6_i32 : i32 to index
    %c0_80 = arith.constant 0 : index
    %190 = vector.load %arg36[%189, %c0_80] : memref<8x512xf32, #tpu.memory_space<vmem>>, vector<1x512xf32>
    tpu.vector_store %arg36[%189, %c0_80], %188 {strides = array<i32>} : memref<8x512xf32, #tpu.memory_space<vmem>>, vector<1x512xf32>,
    %c7_i32 = arith.constant 7 : i32
    %191 = arith.index_cast %c7_i32 : i32 to index
    %c0_81 = arith.constant 0 : index
    %192 = vector.load %arg34[%191, %c0_81] : memref<8x512xf32, #tpu.memory_space<vmem>>, vector<1x512xf32>
    %193 = arith.mulf %192, %188 : vector<1x512xf32>
    %194 = arith.index_cast %c7_i32 : i32 to index
    %c0_82 = arith.constant 0 : index
    %195 = vector.load %arg35[%194, %c0_82] : memref<8x512xf32, #tpu.memory_space<vmem>>, vector<1x512xf32>
    %196 = arith.addf %193, %195 : vector<1x512xf32>
    %197 = arith.index_cast %c7_i32 : i32 to index
    %c0_83 = arith.constant 0 : index
    %198 = vector.load %arg36[%197, %c0_83] : memref<8x512xf32, #tpu.memory_space<vmem>>, vector<1x512xf32>
    tpu.vector_store %arg36[%197, %c0_83], %196 {strides = array<i32>} : memref<8x512xf32, #tpu.memory_space<vmem>>, vector<1x512xf32>,
    %c8_i32 = arith.constant 8 : i32
    %c0_84 = arith.constant 0 : index
    %c0_85 = arith.constant 0 : index
    %199 = vector.load %arg36[%c0_84, %c0_85] : memref<8x512xf32, #tpu.memory_space<vmem>>, vector<8x512xf32>
    %c0_86 = arith.constant 0 : index
    %c0_87 = arith.constant 0 : index
    %200 = vector.load %arg9[%c0_86, %c0_87] : memref<1x64xf32, #tpu.memory_space<vmem>>, vector<1x64xf32>
    %201 = vector.broadcast %200 : vector<1x64xf32> to vector<8x64xf32>
    %202 = arith.mulf %201, %39 : vector<8x64xf32>
    %203 = vector.extract_strided_slice %59 {offsets = [0, 0], sizes = [8, 1], strides = [1, 1]} : vector<8x8xf32> to vector<8x1xf32>
    %204 = vector.extract_strided_slice %199 {offsets = [0, 0], sizes = [8, 64], strides = [1, 1]} : vector<8x512xf32> to vector<8x64xf32>
    %205 = vector.broadcast %203 : vector<8x1xf32> to vector<8x64xf32>
    %206 = arith.mulf %205, %204 : vector<8x64xf32>
    %207 = arith.addf %202, %206 : vector<8x64xf32>
    %208 = vector.extract_strided_slice %59 {offsets = [0, 1], sizes = [8, 1], strides = [1, 1]} : vector<8x8xf32> to vector<8x1xf32>
    %209 = vector.extract_strided_slice %199 {offsets = [0, 64], sizes = [8, 64], strides = [1, 1]} : vector<8x512xf32> to vector<8x64xf32>
    %210 = vector.broadcast %208 : vector<8x1xf32> to vector<8x64xf32>
    %211 = arith.mulf %210, %209 : vector<8x64xf32>
    %212 = arith.addf %207, %211 : vector<8x64xf32>
    %213 = vector.extract_strided_slice %59 {offsets = [0, 2], sizes = [8, 1], strides = [1, 1]} : vector<8x8xf32> to vector<8x1xf32>
    %214 = vector.extract_strided_slice %199 {offsets = [0, 128], sizes = [8, 64], strides = [1, 1]} : vector<8x512xf32> to vector<8x64xf32>
    %215 = vector.broadcast %213 : vector<8x1xf32> to vector<8x64xf32>
    %216 = arith.mulf %215, %214 : vector<8x64xf32>
    %217 = arith.addf %212, %216 : vector<8x64xf32>
    %218 = vector.extract_strided_slice %59 {offsets = [0, 3], sizes = [8, 1], strides = [1, 1]} : vector<8x8xf32> to vector<8x1xf32>
    %219 = vector.extract_strided_slice %199 {offsets = [0, 192], sizes = [8, 64], strides = [1, 1]} : vector<8x512xf32> to vector<8x64xf32>
    %220 = vector.broadcast %218 : vector<8x1xf32> to vector<8x64xf32>
    %221 = arith.mulf %220, %219 : vector<8x64xf32>
    %222 = arith.addf %217, %221 : vector<8x64xf32>
    %223 = vector.extract_strided_slice %59 {offsets = [0, 4], sizes = [8, 1], strides = [1, 1]} : vector<8x8xf32> to vector<8x1xf32>
    %224 = vector.extract_strided_slice %199 {offsets = [0, 256], sizes = [8, 64], strides = [1, 1]} : vector<8x512xf32> to vector<8x64xf32>
    %225 = vector.broadcast %223 : vector<8x1xf32> to vector<8x64xf32>
    %226 = arith.mulf %225, %224 : vector<8x64xf32>
    %227 = arith.addf %222, %226 : vector<8x64xf32>
    %228 = vector.extract_strided_slice %59 {offsets = [0, 5], sizes = [8, 1], strides = [1, 1]} : vector<8x8xf32> to vector<8x1xf32>
    %229 = vector.extract_strided_slice %199 {offsets = [0, 320], sizes = [8, 64], strides = [1, 1]} : vector<8x512xf32> to vector<8x64xf32>
    %230 = vector.broadcast %228 : vector<8x1xf32> to vector<8x64xf32>
    %231 = arith.mulf %230, %229 : vector<8x64xf32>
    %232 = arith.addf %227, %231 : vector<8x64xf32>
    %233 = vector.extract_strided_slice %59 {offsets = [0, 6], sizes = [8, 1], strides = [1, 1]} : vector<8x8xf32> to vector<8x1xf32>
    %234 = vector.extract_strided_slice %199 {offsets = [0, 384], sizes = [8, 64], strides = [1, 1]} : vector<8x512xf32> to vector<8x64xf32>
    %235 = vector.broadcast %233 : vector<8x1xf32> to vector<8x64xf32>
    %236 = arith.mulf %235, %234 : vector<8x64xf32>
    %237 = arith.addf %232, %236 : vector<8x64xf32>
    %238 = vector.extract_strided_slice %59 {offsets = [0, 7], sizes = [8, 1], strides = [1, 1]} : vector<8x8xf32> to vector<8x1xf32>
    %239 = vector.extract_strided_slice %199 {offsets = [0, 448], sizes = [8, 64], strides = [1, 1]} : vector<8x512xf32> to vector<8x64xf32>
    %240 = vector.broadcast %238 : vector<8x1xf32> to vector<8x64xf32>
    %241 = arith.mulf %240, %239 : vector<8x64xf32>
    %242 = arith.addf %237, %241 : vector<8x64xf32>
    %cst_88 = arith.constant 0.000000e+00 : f32
    %243 = vector.broadcast %cst_88 : f32 to vector<8x64xf32>
    %244 = arith.subf %243, %5 : vector<8x64xf32>
    %245 = math.exp %244 : vector<8x64xf32>
    %cst_89 = arith.constant 1.000000e+00 : f32
    %246 = vector.broadcast %cst_89 : f32 to vector<8x64xf32>
    %247 = arith.addf %246, %245 : vector<8x64xf32>
    %cst_90 = arith.constant 1.000000e+00 : f32
    %248 = vector.broadcast %cst_90 : f32 to vector<8x64xf32>
    %249 = arith.divf %248, %247 : vector<8x64xf32>
    %250 = arith.mulf %5, %249 : vector<8x64xf32>
    %251 = arith.mulf %242, %250 : vector<8x64xf32>
    %c0_91 = arith.constant 0 : index
    %c0_92 = arith.constant 0 : index
    %252 = vector.load %arg10[%c0_91, %c0_92] : memref<64x32xf32, #tpu.memory_space<vmem>>, vector<64x32xf32>
    %cst_93 = arith.constant dense<0.000000e+00> : vector<8x32xf32>
    %253 = tpu.matmul %251, %252, %cst_93 {dimension_numbers = #tpu.dot_dimension_numbers<[1], [0], [0], [1], [0, 0, 1, 1], [], []>} : vector<8x64xf32>, vector<64x32xf32>, vector<8x32xf32> -> vector<8x32xf32>
    %254 = arith.addf %253, %1 : vector<8x32xf32>
    %c0_94 = arith.constant 0 : index
    %c0_95 = arith.constant 0 : index
    %255 = vector.load %arg11[%c0_94, %c0_95] : memref<1x32xf32, #tpu.memory_space<vmem>>, vector<1x32xf32>
    %c0_96 = arith.constant 0 : index
    %c0_97 = arith.constant 0 : index
    %256 = vector.load %arg12[%c0_96, %c0_97] : memref<1x32xf32, #tpu.memory_space<vmem>>, vector<1x32xf32>
    %cst_98 = arith.constant dense<0.000000e+00> : vector<8xf32>
    %257 = vector.multi_reduction <add>, %254, %cst_98 [1] : vector<8x32xf32> to vector<8xf32>
    %258 = vector.shape_cast %257 : vector<8xf32> to vector<8x1xf32>
    %cst_99 = arith.constant 3.200000e+01 : f32
    %259 = vector.broadcast %cst_99 : f32 to vector<8x1xf32>
    %260 = arith.divf %258, %259 : vector<8x1xf32>
    %261 = vector.broadcast %260 : vector<8x1xf32> to vector<8x32xf32>
    %262 = arith.subf %254, %261 : vector<8x32xf32>
    %263 = arith.mulf %262, %262 : vector<8x32xf32>
    %cst_100 = arith.constant dense<0.000000e+00> : vector<8xf32>
    %264 = vector.multi_reduction <add>, %263, %cst_100 [1] : vector<8x32xf32> to vector<8xf32>
    %265 = vector.shape_cast %264 : vector<8xf32> to vector<8x1xf32>
    %cst_101 = arith.constant 3.200000e+01 : f32
    %266 = vector.broadcast %cst_101 : f32 to vector<8x1xf32>
    %267 = arith.divf %265, %266 : vector<8x1xf32>
    %268 = vector.broadcast %260 : vector<8x1xf32> to vector<8x32xf32>
    %269 = arith.subf %254, %268 : vector<8x32xf32>
    %cst_102 = arith.constant 9.99999996E-13 : f32
    %270 = vector.broadcast %cst_102 : f32 to vector<8x1xf32>
    %271 = arith.addf %267, %270 : vector<8x1xf32>
    %272 = math.rsqrt %271 : vector<8x1xf32>
    %273 = vector.broadcast %272 : vector<8x1xf32> to vector<8x32xf32>
    %274 = arith.mulf %269, %273 : vector<8x32xf32>
    %275 = vector.broadcast %255 : vector<1x32xf32> to vector<8x32xf32>
    %276 = arith.mulf %274, %275 : vector<8x32xf32>
    %277 = vector.broadcast %256 : vector<1x32xf32> to vector<8x32xf32>
    %278 = arith.addf %276, %277 : vector<8x32xf32>
    %c0_103 = arith.constant 0 : index
    %c0_104 = arith.constant 0 : index
    %279 = vector.load %arg13[%c0_103, %c0_104] : memref<32x32xf32, #tpu.memory_space<vmem>>, vector<32x32xf32>
    %cst_105 = arith.constant dense<0.000000e+00> : vector<8x32xf32>
    %280 = tpu.matmul %278, %279, %cst_105 {dimension_numbers = #tpu.dot_dimension_numbers<[1], [0], [0], [1], [0, 0, 1, 1], [], []>} : vector<8x32xf32>, vector<32x32xf32>, vector<8x32xf32> -> vector<8x32xf32>
    %c0_106 = arith.constant 0 : index
    %c0_107 = arith.constant 0 : index
    %281 = vector.load %arg14[%c0_106, %c0_107] : memref<1x32xf32, #tpu.memory_space<vmem>>, vector<1x32xf32>
    %282 = vector.broadcast %281 : vector<1x32xf32> to vector<8x32xf32>
    %283 = arith.addf %280, %282 : vector<8x32xf32>
    %c0_108 = arith.constant 0 : index
    %c0_109 = arith.constant 0 : index
    %284 = vector.load %arg15[%c0_108, %c0_109] : memref<32x32xf32, #tpu.memory_space<vmem>>, vector<32x32xf32>
    %cst_110 = arith.constant dense<0.000000e+00> : vector<8x32xf32>
    %285 = tpu.matmul %278, %284, %cst_110 {dimension_numbers = #tpu.dot_dimension_numbers<[1], [0], [0], [1], [0, 0, 1, 1], [], []>} : vector<8x32xf32>, vector<32x32xf32>, vector<8x32xf32> -> vector<8x32xf32>
    %c0_111 = arith.constant 0 : index
    %c0_112 = arith.constant 0 : index
    %286 = vector.load %arg16[%c0_111, %c0_112] : memref<1x32xf32, #tpu.memory_space<vmem>>, vector<1x32xf32>
    %287 = vector.broadcast %286 : vector<1x32xf32> to vector<8x32xf32>
    %288 = arith.addf %285, %287 : vector<8x32xf32>
    %289 = arith.mulf %283, %283 : vector<8x32xf32>
    %cst_113 = arith.constant dense<0.000000e+00> : vector<8xf32>
    %290 = vector.multi_reduction <add>, %289, %cst_113 [1] : vector<8x32xf32> to vector<8xf32>
    %291 = vector.shape_cast %290 : vector<8xf32> to vector<8x1xf32>
    %292 = math.sqrt %291 : vector<8x1xf32>
    %cst_114 = arith.constant 9.99999996E-13 : f32
    %293 = vector.broadcast %cst_114 : f32 to vector<8x1xf32>
    %294 = arith.maximumf %292, %293 : vector<8x1xf32>
    %295 = vector.broadcast %294 : vector<8x1xf32> to vector<8x32xf32>
    %296 = arith.divf %283, %295 : vector<8x32xf32>
    %297 = arith.mulf %288, %288 : vector<8x32xf32>
    %cst_115 = arith.constant dense<0.000000e+00> : vector<8xf32>
    %298 = vector.multi_reduction <add>, %297, %cst_115 [1] : vector<8x32xf32> to vector<8xf32>
    %299 = vector.shape_cast %298 : vector<8xf32> to vector<8x1xf32>
    %300 = math.sqrt %299 : vector<8x1xf32>
    %cst_116 = arith.constant 9.99999996E-13 : f32
    %301 = vector.broadcast %cst_116 : f32 to vector<8x1xf32>
    %302 = arith.maximumf %300, %301 : vector<8x1xf32>
    %303 = vector.broadcast %302 : vector<8x1xf32> to vector<8x32xf32>
    %304 = arith.divf %288, %303 : vector<8x32xf32>
    %cst_117 = arith.constant 5.000000e-01 : f32
    %305 = vector.broadcast %cst_117 : f32 to vector<8x32xf32>
    %306 = arith.mulf %305, %296 : vector<8x32xf32>
    %cst_118 = arith.constant 0.707106769 : f32
    %307 = vector.broadcast %cst_118 : f32 to vector<8x32xf32>
    %308 = arith.mulf %296, %307 : vector<8x32xf32>
    %309 = math.erf %308 : vector<8x32xf32>
    %cst_119 = arith.constant 1.000000e+00 : f32
    %310 = vector.broadcast %cst_119 : f32 to vector<8x32xf32>
    %311 = arith.addf %310, %309 : vector<8x32xf32>
    %312 = arith.mulf %306, %311 : vector<8x32xf32>
    %c0_120 = arith.constant 0 : index
    %c0_121 = arith.constant 0 : index
    %313 = vector.load %arg17[%c0_120, %c0_121] : memref<1x32xf32, #tpu.memory_space<vmem>>, vector<1x32xf32>
    %314 = vector.broadcast %313 : vector<1x32xf32> to vector<8x32xf32>
    %315 = arith.mulf %312, %314 : vector<8x32xf32>
    %cst_122 = arith.constant dense<0.000000e+00> : vector<8xf32>
    %316 = vector.multi_reduction <add>, %315, %cst_122 [1] : vector<8x32xf32> to vector<8xf32>
    %317 = vector.shape_cast %316 : vector<8xf32> to vector<8x1xf32>
    %cst_123 = arith.constant 0.176776692 : f32
    %318 = vector.broadcast %cst_123 : f32 to vector<8x1xf32>
    %319 = arith.mulf %317, %318 : vector<8x1xf32>
    %320 = arith.mulf %319, %319 : vector<8x1xf32>
    %cst_124 = arith.constant dense<0.000000e+00> : vector<1xf32>
    %321 = vector.multi_reduction <add>, %320, %cst_124 [0] : vector<8x1xf32> to vector<1xf32>
    %322 = vector.shape_cast %321 : vector<1xf32> to vector<1x1xf32>
    %323 = math.sqrt %322 : vector<1x1xf32>
    %cst_125 = arith.constant 9.99999996E-13 : f32
    %324 = vector.broadcast %cst_125 : f32 to vector<1x1xf32>
    %325 = arith.maximumf %323, %324 : vector<1x1xf32>
    %326 = vector.broadcast %325 : vector<1x1xf32> to vector<8x1xf32>
    %327 = arith.divf %319, %326 : vector<8x1xf32>
    %328 = vector.broadcast %327 : vector<8x1xf32> to vector<8x32xf32>
    %329 = arith.mulf %328, %312 : vector<8x32xf32>
    %cst_126 = arith.constant dense<0.000000e+00> : vector<32xf32>
    %330 = vector.multi_reduction <add>, %329, %cst_126 [0] : vector<8x32xf32> to vector<32xf32>
    %331 = vector.shape_cast %330 : vector<32xf32> to vector<1x32xf32>
    %332 = vector.broadcast %331 : vector<1x32xf32> to vector<8x32xf32>
    %333 = arith.mulf %332, %304 : vector<8x32xf32>
    %c0_127 = arith.constant 0 : index
    %c0_128 = arith.constant 0 : index
    %334 = vector.load %arg18[%c0_127, %c0_128] : memref<32x32xf32, #tpu.memory_space<vmem>>, vector<32x32xf32>
    %cst_129 = arith.constant dense<0.000000e+00> : vector<8x32xf32>
    %335 = tpu.matmul %333, %334, %cst_129 {dimension_numbers = #tpu.dot_dimension_numbers<[1], [0], [0], [1], [0, 0, 1, 1], [], []>} : vector<8x32xf32>, vector<32x32xf32>, vector<8x32xf32> -> vector<8x32xf32>
    %c0_130 = arith.constant 0 : index
    %c0_131 = arith.constant 0 : index
    %336 = vector.load %arg19[%c0_130, %c0_131] : memref<1x32xf32, #tpu.memory_space<vmem>>, vector<1x32xf32>
    %337 = vector.broadcast %336 : vector<1x32xf32> to vector<8x32xf32>
    %338 = arith.addf %335, %337 : vector<8x32xf32>
    %c0_132 = arith.constant 0 : index
    %c0_133 = arith.constant 0 : index
    %339 = vector.load %arg20[%c0_132, %c0_133] : memref<1x32xf32, #tpu.memory_space<vmem>>, vector<1x32xf32>
    %c0_134 = arith.constant 0 : index
    %c0_135 = arith.constant 0 : index
    %340 = vector.load %arg21[%c0_134, %c0_135] : memref<1x32xf32, #tpu.memory_space<vmem>>, vector<1x32xf32>
    %cst_136 = arith.constant dense<0.000000e+00> : vector<8xf32>
    %341 = vector.multi_reduction <add>, %278, %cst_136 [1] : vector<8x32xf32> to vector<8xf32>
    %342 = vector.shape_cast %341 : vector<8xf32> to vector<8x1xf32>
    %cst_137 = arith.constant 3.200000e+01 : f32
    %343 = vector.broadcast %cst_137 : f32 to vector<8x1xf32>
    %344 = arith.divf %342, %343 : vector<8x1xf32>
    %345 = vector.broadcast %344 : vector<8x1xf32> to vector<8x32xf32>
    %346 = arith.subf %278, %345 : vector<8x32xf32>
    %347 = arith.mulf %346, %346 : vector<8x32xf32>
    %cst_138 = arith.constant dense<0.000000e+00> : vector<8xf32>
    %348 = vector.multi_reduction <add>, %347, %cst_138 [1] : vector<8x32xf32> to vector<8xf32>
    %349 = vector.shape_cast %348 : vector<8xf32> to vector<8x1xf32>
    %cst_139 = arith.constant 3.200000e+01 : f32
    %350 = vector.broadcast %cst_139 : f32 to vector<8x1xf32>
    %351 = arith.divf %349, %350 : vector<8x1xf32>
    %352 = vector.broadcast %344 : vector<8x1xf32> to vector<8x32xf32>
    %353 = arith.subf %278, %352 : vector<8x32xf32>
    %cst_140 = arith.constant 9.99999996E-13 : f32
    %354 = vector.broadcast %cst_140 : f32 to vector<8x1xf32>
    %355 = arith.addf %351, %354 : vector<8x1xf32>
    %356 = math.rsqrt %355 : vector<8x1xf32>
    %357 = vector.broadcast %356 : vector<8x1xf32> to vector<8x32xf32>
    %358 = arith.mulf %353, %357 : vector<8x32xf32>
    %359 = vector.broadcast %339 : vector<1x32xf32> to vector<8x32xf32>
    %360 = arith.mulf %358, %359 : vector<8x32xf32>
    %361 = vector.broadcast %340 : vector<1x32xf32> to vector<8x32xf32>
    %362 = arith.addf %360, %361 : vector<8x32xf32>
    %363 = arith.mulf %338, %362 : vector<8x32xf32>
    %c0_141 = arith.constant 0 : index
    %c0_142 = arith.constant 0 : index
    %364 = vector.load %arg22[%c0_141, %c0_142] : memref<32x32xf32, #tpu.memory_space<vmem>>, vector<32x32xf32>
    %cst_143 = arith.constant dense<0.000000e+00> : vector<8x32xf32>
    %365 = tpu.matmul %363, %364, %cst_143 {dimension_numbers = #tpu.dot_dimension_numbers<[1], [0], [0], [1], [0, 0, 1, 1], [], []>} : vector<8x32xf32>, vector<32x32xf32>, vector<8x32xf32> -> vector<8x32xf32>
    %c0_144 = arith.constant 0 : index
    %c0_145 = arith.constant 0 : index
    %366 = vector.load %arg23[%c0_144, %c0_145] : memref<1x32xf32, #tpu.memory_space<vmem>>, vector<1x32xf32>
    %367 = vector.broadcast %366 : vector<1x32xf32> to vector<8x32xf32>
    %368 = arith.addf %365, %367 : vector<8x32xf32>
    %369 = arith.addf %368, %278 : vector<8x32xf32>
    %c0_146 = arith.constant 0 : index
    %c0_147 = arith.constant 0 : index
    %370 = vector.load %arg24[%c0_146, %c0_147] : memref<1x32xf32, #tpu.memory_space<vmem>>, vector<1x32xf32>
    %c0_148 = arith.constant 0 : index
    %c0_149 = arith.constant 0 : index
    %371 = vector.load %arg25[%c0_148, %c0_149] : memref<1x32xf32, #tpu.memory_space<vmem>>, vector<1x32xf32>
    %cst_150 = arith.constant dense<0.000000e+00> : vector<8xf32>
    %372 = vector.multi_reduction <add>, %369, %cst_150 [1] : vector<8x32xf32> to vector<8xf32>
    %373 = vector.shape_cast %372 : vector<8xf32> to vector<8x1xf32>
    %cst_151 = arith.constant 3.200000e+01 : f32
    %374 = vector.broadcast %cst_151 : f32 to vector<8x1xf32>
    %375 = arith.divf %373, %374 : vector<8x1xf32>
    %376 = vector.broadcast %375 : vector<8x1xf32> to vector<8x32xf32>
    %377 = arith.subf %369, %376 : vector<8x32xf32>
    %378 = arith.mulf %377, %377 : vector<8x32xf32>
    %cst_152 = arith.constant dense<0.000000e+00> : vector<8xf32>
    %379 = vector.multi_reduction <add>, %378, %cst_152 [1] : vector<8x32xf32> to vector<8xf32>
    %380 = vector.shape_cast %379 : vector<8xf32> to vector<8x1xf32>
    %cst_153 = arith.constant 3.200000e+01 : f32
    %381 = vector.broadcast %cst_153 : f32 to vector<8x1xf32>
    %382 = arith.divf %380, %381 : vector<8x1xf32>
    %383 = vector.broadcast %375 : vector<8x1xf32> to vector<8x32xf32>
    %384 = arith.subf %369, %383 : vector<8x32xf32>
    %cst_154 = arith.constant 9.99999996E-13 : f32
    %385 = vector.broadcast %cst_154 : f32 to vector<8x1xf32>
    %386 = arith.addf %382, %385 : vector<8x1xf32>
    %387 = math.rsqrt %386 : vector<8x1xf32>
    %388 = vector.broadcast %387 : vector<8x1xf32> to vector<8x32xf32>
    %389 = arith.mulf %384, %388 : vector<8x32xf32>
    %390 = vector.broadcast %370 : vector<1x32xf32> to vector<8x32xf32>
    %391 = arith.mulf %389, %390 : vector<8x32xf32>
    %392 = vector.broadcast %371 : vector<1x32xf32> to vector<8x32xf32>
    %393 = arith.addf %391, %392 : vector<8x32xf32>
    %c0_155 = arith.constant 0 : index
    %c0_156 = arith.constant 0 : index
    %394 = vector.load %arg26[%c0_155, %c0_156] : memref<32x128xf32, #tpu.memory_space<vmem>>, vector<32x128xf32>
    %cst_157 = arith.constant dense<0.000000e+00> : vector<8x128xf32>
    %395 = tpu.matmul %393, %394, %cst_157 {dimension_numbers = #tpu.dot_dimension_numbers<[1], [0], [0], [1], [0, 0, 1, 1], [], []>} : vector<8x32xf32>, vector<32x128xf32>, vector<8x128xf32> -> vector<8x128xf32>
    %c0_158 = arith.constant 0 : index
    %c0_159 = arith.constant 0 : index
    %396 = vector.load %arg27[%c0_158, %c0_159] : memref<1x128xf32, #tpu.memory_space<vmem>>, vector<1x128xf32>
    %397 = vector.broadcast %396 : vector<1x128xf32> to vector<8x128xf32>
    %398 = arith.addf %395, %397 : vector<8x128xf32>
    %cst_160 = arith.constant 5.000000e-01 : f32
    %399 = vector.broadcast %cst_160 : f32 to vector<8x128xf32>
    %400 = arith.mulf %399, %398 : vector<8x128xf32>
    %cst_161 = arith.constant 0.707106769 : f32
    %401 = vector.broadcast %cst_161 : f32 to vector<8x128xf32>
    %402 = arith.mulf %398, %401 : vector<8x128xf32>
    %403 = math.erf %402 : vector<8x128xf32>
    %cst_162 = arith.constant 1.000000e+00 : f32
    %404 = vector.broadcast %cst_162 : f32 to vector<8x128xf32>
    %405 = arith.addf %404, %403 : vector<8x128xf32>
    %406 = arith.mulf %400, %405 : vector<8x128xf32>
    %c0_163 = arith.constant 0 : index
    %c0_164 = arith.constant 0 : index
    %407 = vector.load %arg28[%c0_163, %c0_164] : memref<128x32xf32, #tpu.memory_space<vmem>>, vector<128x32xf32>
    %cst_165 = arith.constant dense<0.000000e+00> : vector<8x32xf32>
    %408 = tpu.matmul %406, %407, %cst_165 {dimension_numbers = #tpu.dot_dimension_numbers<[1], [0], [0], [1], [0, 0, 1, 1], [], []>} : vector<8x128xf32>, vector<128x32xf32>, vector<8x32xf32> -> vector<8x32xf32>
    %c0_166 = arith.constant 0 : index
    %c0_167 = arith.constant 0 : index
    %409 = vector.load %arg29[%c0_166, %c0_167] : memref<1x32xf32, #tpu.memory_space<vmem>>, vector<1x32xf32>
    %410 = vector.broadcast %409 : vector<1x32xf32> to vector<8x32xf32>
    %411 = arith.addf %408, %410 : vector<8x32xf32>
    %412 = arith.addf %411, %393 : vector<8x32xf32>
    %c0_168 = arith.constant 0 : index
    %c0_169 = arith.constant 0 : index
    %413 = vector.load %arg30[%c0_168, %c0_169] : memref<1x32xf32, #tpu.memory_space<vmem>>, vector<1x32xf32>
    %c0_170 = arith.constant 0 : index
    %c0_171 = arith.constant 0 : index
    %414 = vector.load %arg31[%c0_170, %c0_171] : memref<1x32xf32, #tpu.memory_space<vmem>>, vector<1x32xf32>
    %cst_172 = arith.constant dense<0.000000e+00> : vector<8xf32>
    %415 = vector.multi_reduction <add>, %412, %cst_172 [1] : vector<8x32xf32> to vector<8xf32>
    %416 = vector.shape_cast %415 : vector<8xf32> to vector<8x1xf32>
    %cst_173 = arith.constant 3.200000e+01 : f32
    %417 = vector.broadcast %cst_173 : f32 to vector<8x1xf32>
    %418 = arith.divf %416, %417 : vector<8x1xf32>
    %419 = vector.broadcast %418 : vector<8x1xf32> to vector<8x32xf32>
    %420 = arith.subf %412, %419 : vector<8x32xf32>
    %421 = arith.mulf %420, %420 : vector<8x32xf32>
    %cst_174 = arith.constant dense<0.000000e+00> : vector<8xf32>
    %422 = vector.multi_reduction <add>, %421, %cst_174 [1] : vector<8x32xf32> to vector<8xf32>
    %423 = vector.shape_cast %422 : vector<8xf32> to vector<8x1xf32>
    %cst_175 = arith.constant 3.200000e+01 : f32
    %424 = vector.broadcast %cst_175 : f32 to vector<8x1xf32>
    %425 = arith.divf %423, %424 : vector<8x1xf32>
    %426 = vector.broadcast %418 : vector<8x1xf32> to vector<8x32xf32>
    %427 = arith.subf %412, %426 : vector<8x32xf32>
    %cst_176 = arith.constant 9.99999996E-13 : f32
    %428 = vector.broadcast %cst_176 : f32 to vector<8x1xf32>
    %429 = arith.addf %425, %428 : vector<8x1xf32>
    %430 = math.rsqrt %429 : vector<8x1xf32>
    %431 = vector.broadcast %430 : vector<8x1xf32> to vector<8x32xf32>
    %432 = arith.mulf %427, %431 : vector<8x32xf32>
    %433 = vector.broadcast %413 : vector<1x32xf32> to vector<8x32xf32>
    %434 = arith.mulf %432, %433 : vector<8x32xf32>
    %435 = vector.broadcast %414 : vector<1x32xf32> to vector<8x32xf32>
    %436 = arith.addf %434, %435 : vector<8x32xf32>
    %c0_177 = arith.constant 0 : index
    %c0_178 = arith.constant 0 : index
    %c0_179 = arith.constant 0 : index
    %437 = vector.load %arg32[%c0_177, %c0_178, %c0_179] : memref<1x8x32xf32, #tpu.memory_space<vmem>>, vector<1x8x32xf32>
    %438 = vector.shape_cast %437 : vector<1x8x32xf32> to vector<8x32xf32>
    %439 = vector.shape_cast %436 : vector<8x32xf32> to vector<1x8x32xf32>
    tpu.vector_store %arg32[%c0_177, %c0_178, %c0_179], %439 {strides = array<i32>} : memref<1x8x32xf32, #tpu.memory_space<vmem>>, vector<1x8x32xf32>,
    return
  }
  func.func @transform_0(%arg0: i32) -> (i32, i32, i32) {
    %c0_i32 = arith.constant 0 : i32
    %c0_i32_0 = arith.constant 0 : i32
    %c0_i32_1 = arith.constant 0 : i32
    return %arg0, %c0_i32, %c0_i32_0 : i32, i32, i32
  }
  func.func @transform_1(%arg0: i32) -> (i32, i32) {
    %c0_i32 = arith.constant 0 : i32
    %c0_i32_0 = arith.constant 0 : i32
    %c0_i32_1 = arith.constant 0 : i32
    return %c0_i32, %c0_i32_0 : i32, i32
  }
  func.func @transform_2(%arg0: i32) -> (i32, i32) {
    %c0_i32 = arith.constant 0 : i32
    %c0_i32_0 = arith.constant 0 : i32
    %c0_i32_1 = arith.constant 0 : i32
    return %c0_i32, %c0_i32_0 : i32, i32
  }
  func.func @transform_3(%arg0: i32) -> (i32, i32) {
    %c0_i32 = arith.constant 0 : i32
    %c0_i32_0 = arith.constant 0 : i32
    %c0_i32_1 = arith.constant 0 : i32
    return %c0_i32, %c0_i32_0 : i32, i32
  }
  func.func @transform_4(%arg0: i32) -> (i32, i32) {
    %c0_i32 = arith.constant 0 : i32
    %c0_i32_0 = arith.constant 0 : i32
    %c0_i32_1 = arith.constant 0 : i32
    return %c0_i32, %c0_i32_0 : i32, i32
  }
  func.func @transform_5(%arg0: i32) -> (i32, i32) {
    %c0_i32 = arith.constant 0 : i32
    %c0_i32_0 = arith.constant 0 : i32
    %c0_i32_1 = arith.constant 0 : i32
    return %c0_i32, %c0_i32_0 : i32, i32
  }
  func.func @transform_6(%arg0: i32) -> (i32, i32) {
    %c0_i32 = arith.constant 0 : i32
    %c0_i32_0 = arith.constant 0 : i32
    %c0_i32_1 = arith.constant 0 : i32
    return %c0_i32, %c0_i32_0 : i32, i32
  }
  func.func @transform_7(%arg0: i32) -> (i32, i32) {
    %c0_i32 = arith.constant 0 : i32
    %c0_i32_0 = arith.constant 0 : i32
    %c0_i32_1 = arith.constant 0 : i32
    return %c0_i32, %c0_i32_0 : i32, i32
  }
  func.func @transform_8(%arg0: i32) -> (i32, i32) {
    %c0_i32 = arith.constant 0 : i32
    %c0_i32_0 = arith.constant 0 : i32
    %c0_i32_1 = arith.constant 0 : i32
    return %c0_i32, %c0_i32_0 : i32, i32
  }
  func.func @transform_9(%arg0: i32) -> (i32, i32) {
    %c0_i32 = arith.constant 0 : i32
    %c0_i32_0 = arith.constant 0 : i32
    %c0_i32_1 = arith.constant 0 : i32
    return %c0_i32, %c0_i32_0 : i32, i32
  }
  func.func @transform_10(%arg0: i32) -> (i32, i32) {
    %c0_i32 = arith.constant 0 : i32
    %c0_i32_0 = arith.constant 0 : i32
    %c0_i32_1 = arith.constant 0 : i32
    return %c0_i32, %c0_i32_0 : i32, i32
  }
  func.func @transform_11(%arg0: i32) -> (i32, i32) {
    %c0_i32 = arith.constant 0 : i32
    %c0_i32_0 = arith.constant 0 : i32
    %c0_i32_1 = arith.constant 0 : i32
    return %c0_i32, %c0_i32_0 : i32, i32
  }
  func.func @transform_12(%arg0: i32) -> (i32, i32) {
    %c0_i32 = arith.constant 0 : i32
    %c0_i32_0 = arith.constant 0 : i32
    %c0_i32_1 = arith.constant 0 : i32
    return %c0_i32, %c0_i32_0 : i32, i32
  }
  func.func @transform_13(%arg0: i32) -> (i32, i32) {
    %c0_i32 = arith.constant 0 : i32
    %c0_i32_0 = arith.constant 0 : i32
    %c0_i32_1 = arith.constant 0 : i32
    return %c0_i32, %c0_i32_0 : i32, i32
  }
  func.func @transform_14(%arg0: i32) -> (i32, i32) {
    %c0_i32 = arith.constant 0 : i32
    %c0_i32_0 = arith.constant 0 : i32
    %c0_i32_1 = arith.constant 0 : i32
    return %c0_i32, %c0_i32_0 : i32, i32
  }
  func.func @transform_15(%arg0: i32) -> (i32, i32) {
    %c0_i32 = arith.constant 0 : i32
    %c0_i32_0 = arith.constant 0 : i32
    %c0_i32_1 = arith.constant 0 : i32
    return %c0_i32, %c0_i32_0 : i32, i32
  }
  func.func @transform_16(%arg0: i32) -> (i32, i32) {
    %c0_i32 = arith.constant 0 : i32
    %c0_i32_0 = arith.constant 0 : i32
    %c0_i32_1 = arith.constant 0 : i32
    return %c0_i32, %c0_i32_0 : i32, i32
  }
  func.func @transform_17(%arg0: i32) -> (i32, i32) {
    %c0_i32 = arith.constant 0 : i32
    %c0_i32_0 = arith.constant 0 : i32
    %c0_i32_1 = arith.constant 0 : i32
    return %c0_i32, %c0_i32_0 : i32, i32
  }
  func.func @transform_18(%arg0: i32) -> (i32, i32) {
    %c0_i32 = arith.constant 0 : i32
    %c0_i32_0 = arith.constant 0 : i32
    %c0_i32_1 = arith.constant 0 : i32
    return %c0_i32, %c0_i32_0 : i32, i32
  }
  func.func @transform_19(%arg0: i32) -> (i32, i32) {
    %c0_i32 = arith.constant 0 : i32
    %c0_i32_0 = arith.constant 0 : i32
    %c0_i32_1 = arith.constant 0 : i32
    return %c0_i32, %c0_i32_0 : i32, i32
  }
  func.func @transform_20(%arg0: i32) -> (i32, i32) {
    %c0_i32 = arith.constant 0 : i32
    %c0_i32_0 = arith.constant 0 : i32
    %c0_i32_1 = arith.constant 0 : i32
    return %c0_i32, %c0_i32_0 : i32, i32
  }
  func.func @transform_21(%arg0: i32) -> (i32, i32) {
    %c0_i32 = arith.constant 0 : i32
    %c0_i32_0 = arith.constant 0 : i32
    %c0_i32_1 = arith.constant 0 : i32
    return %c0_i32, %c0_i32_0 : i32, i32
  }
  func.func @transform_22(%arg0: i32) -> (i32, i32) {
    %c0_i32 = arith.constant 0 : i32
    %c0_i32_0 = arith.constant 0 : i32
    %c0_i32_1 = arith.constant 0 : i32
    return %c0_i32, %c0_i32_0 : i32, i32
  }
  func.func @transform_23(%arg0: i32) -> (i32, i32) {
    %c0_i32 = arith.constant 0 : i32
    %c0_i32_0 = arith.constant 0 : i32
    %c0_i32_1 = arith.constant 0 : i32
    return %c0_i32, %c0_i32_0 : i32, i32
  }
  func.func @transform_24(%arg0: i32) -> (i32, i32) {
    %c0_i32 = arith.constant 0 : i32
    %c0_i32_0 = arith.constant 0 : i32
    %c0_i32_1 = arith.constant 0 : i32
    return %c0_i32, %c0_i32_0 : i32, i32
  }
  func.func @transform_25(%arg0: i32) -> (i32, i32) {
    %c0_i32 = arith.constant 0 : i32
    %c0_i32_0 = arith.constant 0 : i32
    %c0_i32_1 = arith.constant 0 : i32
    return %c0_i32, %c0_i32_0 : i32, i32
  }
  func.func @transform_26(%arg0: i32) -> (i32, i32) {
    %c0_i32 = arith.constant 0 : i32
    %c0_i32_0 = arith.constant 0 : i32
    %c0_i32_1 = arith.constant 0 : i32
    return %c0_i32, %c0_i32_0 : i32, i32
  }
  func.func @transform_27(%arg0: i32) -> (i32, i32) {
    %c0_i32 = arith.constant 0 : i32
    %c0_i32_0 = arith.constant 0 : i32
    %c0_i32_1 = arith.constant 0 : i32
    return %c0_i32, %c0_i32_0 : i32, i32
  }
  func.func @transform_28(%arg0: i32) -> (i32, i32) {
    %c0_i32 = arith.constant 0 : i32
    %c0_i32_0 = arith.constant 0 : i32
    %c0_i32_1 = arith.constant 0 : i32
    return %c0_i32, %c0_i32_0 : i32, i32
  }
  func.func @transform_29(%arg0: i32) -> (i32, i32) {
    %c0_i32 = arith.constant 0 : i32
    %c0_i32_0 = arith.constant 0 : i32
    %c0_i32_1 = arith.constant 0 : i32
    return %c0_i32, %c0_i32_0 : i32, i32
  }
  func.func @transform_30(%arg0: i32) -> (i32, i32) {
    %c0_i32 = arith.constant 0 : i32
    %c0_i32_0 = arith.constant 0 : i32
    %c0_i32_1 = arith.constant 0 : i32
    return %c0_i32, %c0_i32_0 : i32, i32
  }
  func.func @transform_31(%arg0: i32) -> (i32, i32, i32) {
    %c0_i32 = arith.constant 0 : i32
    %c0_i32_0 = arith.constant 0 : i32
    %c0_i32_1 = arith.constant 0 : i32
    return %arg0, %c0_i32, %c0_i32_0 : i32, i32, i32
  }
}

</mosaic_0001>

<bundles_post_ra>
// kernel: tpu_custom_call.1
= control target key start
LH: loop header
LB: loop body
LE: loop exit
PB: predicated region body
PF: predicated region fallthrough
CT: control target
= control target key end

     0   :  { %s2332_s6 = smov 1   ;;  %s2333_s10 = smov 2   ;;  %s2855_s0 = inlined_call_operand.smem [shape: u32[32], index: -1, kind: input, shape index: {}] }
   0x1   :  { %s2390_s5 = sld [smem:[%s2855_s0]]   ;;  %s2334_s14 = smov 3  }
   0x2   :  { %s2395_s9 = sld [smem:[%s2855_s0 + %s2332_s6]]   ;;  %s2335_s18 = smov 4  }
   0x3   :  { %s2400_s13 = sld [smem:[%s2855_s0 + %s2333_s10]]   ;;  %s2336_s22 = smov 5  }
   0x4   :  { %s2405_s17 = sld [smem:[%s2855_s0 + %s2334_s14]]   ;;  %s2337_s26 = smov 6  }
   0x5   :  { %s2410_s21 = sld [smem:[%s2855_s0 + %s2335_s18]]   ;;  %s2338_s30 = smov 7  }
   0x6   :  { %s2415_s25 = sld [smem:[%s2855_s0 + %s2336_s22]]   ;;  %s2339_s4 = smov 8  }
   0x7   :  { %2865 = sst [smem:[#allocation9_spill]] %s2390_s5  ;;  %s2340_s10 = smov 9  }
   0x8   :  { %2866 = sst [smem:[#allocation10_spill]] %s2395_s9  ;;  %s2341_s15 = smov 10  }
   0x9   :  { %s2420_s29 = sld [smem:[%s2855_s0 + %s2337_s26]]   ;;  %s2342_s20 = smov 11  }
   0xa   :  { %s2425_s3 = sld [smem:[%s2855_s0 + %s2338_s30]]   ;;  %s2343_s26 = smov 12  }
   0xb   :  { %s2430_s8 = sld [smem:[%s2855_s0 + %s2339_s4]]   ;;  %s2344_s1 = smov 13  }
   0xc   :  { %s2435_s14 = sld [smem:[%s2855_s0 + %s2340_s10]]   ;;  %s2345_s7 = smov 14  }
   0xd   :  { %s2440_s19 = sld [smem:[%s2855_s0 + %s2341_s15]]   ;;  %s2346_s15 = smov 15  }
   0xe   :  { %s2445_s24 = sld [smem:[%s2855_s0 + %s2342_s20]]   ;;  %s2347_s22 = smov 16  }
   0xf   :  { %s2450_s30 = sld [smem:[%s2855_s0 + %s2343_s26]]   ;;  %s2348_s28 = smov 17  }
  0x10   :  { %2867 = sst [smem:[#allocation11_spill]] %s2425_s3 }
  0x11   :  { %2868 = sst [smem:[#allocation12_spill]] %s2430_s8 }
  0x12   :  { %s2455_s6 = sld [smem:[%s2855_s0 + %s2344_s1]]  }
  0x13   :  { %s2460_s12 = sld [smem:[%s2855_s0 + %s2345_s7]]   ;;  %s2349_s7 = smov 18  }
  0x14   :  { %s2465_s20 = sld [smem:[%s2855_s0 + %s2346_s15]]   ;;  %s2350_s15 = smov 19  }
  0x15   :  { %s2470_s27 = sld [smem:[%s2855_s0 + %s2347_s22]]   ;;  %s2351_s22 = smov 20  }
  0x16   :  { %s2475_s4 = sld [smem:[%s2855_s0 + %s2348_s28]]   ;;  %s2352_s28 = smov 21  }
  0x18   :  { %2869 = sst [smem:[#allocation13_spill]] %s2455_s6 }
  0x19   :  { %2870 = sst [smem:[#allocation14_spill]] %s2460_s12 }
  0x1a   :  { %2871 = sst [smem:[#allocation15_spill]] %s2465_s20 }
  0x1b   :  { %2872 = sst [smem:[#allocation16_spill]] %s2470_s27 }
  0x1c   :  { %2873 = sst [smem:[#allocation17_spill]] %s2475_s4 }
  0x1d   :  { %s2480_s6 = sld [smem:[%s2855_s0 + %s2349_s7]]   ;;  %s2353_s7 = smov 22  }
  0x1e   :  { %s2485_s20 = sld [smem:[%s2855_s0 + %s2350_s15]]   ;;  %s2354_s15 = smov 23  }
  0x1f   :  { %s2490_s27 = sld [smem:[%s2855_s0 + %s2351_s22]]   ;;  %s2355_s22 = smov 24  }
  0x20   :  { %s2495_s4 = sld [smem:[%s2855_s0 + %s2352_s28]]   ;;  %s2356_s28 = smov 25  }
  0x23   :  { %2874 = sst [smem:[#allocation18_spill]] %s2480_s6 }
  0x24   :  { %2875 = sst [smem:[#allocation19_spill]] %s2485_s20 }
  0x25   :  { %2876 = sst [smem:[#allocation20_spill]] %s2490_s27 }
  0x26   :  { %2877 = sst [smem:[#allocation21_spill]] %s2495_s4 }
  0x27   :  { %s2500_s6 = sld [smem:[%s2855_s0 + %s2353_s7]]   ;;  %s2357_s7 = smov 26  }
  0x28   :  { %s2505_s20 = sld [smem:[%s2855_s0 + %s2354_s15]]   ;;  %s2358_s15 = smov 27  }
  0x29   :  { %s2510_s27 = sld [smem:[%s2855_s0 + %s2355_s22]]   ;;  %s2359_s22 = smov 28  }
  0x2a   :  { %s2515_s4 = sld [smem:[%s2855_s0 + %s2356_s28]]   ;;  %s2360_s28 = smov 29  }
  0x2d   :  { %2878 = sst [smem:[#allocation22_spill]] %s2500_s6 }
  0x2e   :  { %2879 = sst [smem:[#allocation23_spill]] %s2505_s20 }
  0x2f   :  { %2880 = sst [smem:[#allocation24_spill]] %s2510_s27 }
  0x30   :  { %2881 = sst [smem:[#allocation25_spill]] %s2515_s4 }
  0x31   :  { %s2520_s6 = sld [smem:[%s2855_s0 + %s2357_s7]]   ;;  %s2361_s7 = smov 30  }
  0x32   :  { %s2525_s20 = sld [smem:[%s2855_s0 + %s2358_s15]]   ;;  %s2362_s15 = smov 31  }
  0x33   :  { %s2530_s27 = sld [smem:[%s2855_s0 + %s2359_s22]]  }
  0x34   :  { %s2535_s4 = sld [smem:[%s2855_s0 + %s2360_s28]]  }
  0x37   :  { %2882 = sst [smem:[#allocation26_spill]] %s2520_s6 }
  0x38   :  { %2883 = sst [smem:[#allocation27_spill]] %s2525_s20 }
  0x39   :  { %s2540_s6 = sld [smem:[%s2855_s0 + %s2361_s7]]  }
  0x3a   :  { %2884 = sst [smem:[#allocation28_spill]] %s2535_s4 }
  0x3b   :  { %s2545_s20 = sld [smem:[%s2855_s0 + %s2362_s15]]  }
  0x3c   :  { %68 = vsyncpa [#allocation7], 0 }
  0x3d   :  { %70 = vsyncpa [#allocation7 + $0x1], 0  ;;  %s2547_s22 = smov 0   ;;  %s2549_s23 = smov 0  }
  0x3e   :  { %s2551_s26 = smov 0   ;;  %s2553_s28 = smov 0  }
  0x3f LB: > { %s2885_s12 = sld [smem:[#allocation14_spill]]  ;;  %s2568_s0 = sadd.s32 4294967295, %s2330_s28   ;;  %s2322_s23 = sphi %s2549_s23, %s2910_s23   ;;  %s2318_s22 = sphi %s2547_s22, %s2909_s22   ;;  %s2330_s28 = sphi %s2553_s28, %s2912_s28   ;;  %s2326_s26 = sphi %s2551_s26, %s2911_s26  }
  0x40   : > { %s2886_s9 = sld [smem:[#allocation10_spill]]  ;;  %s2068_s1 = sadd.s32 4294967294, %s2330_s28  }
  0x41   : > { %s2572_s2 = sadd.s32 1, %s2330_s28   ;;  %s739_s7 = sadd.s32 1, %s2326_s26 }
  0x42   : > { %s736_s10 = ssub.s32 %s2330_s28, %s2572_s2  ;;  %p749_p0 = scmp.ne.s32.totalorder %s2326_s26, %s2322_s23 }
  0x43   : > { %p737_p1 = scmp.eq.s32.totalorder %s736_s10, 0  ;;  %p750_p2 = scmp.eq.s32.totalorder %s2568_s0, 1 }
  0x44   : > { %p755_p3 = scmp.ne.s32.totalorder %s2322_s23, %s2318_s22  ;;  %p756_p4 = scmp.eq.s32.totalorder %s2068_s1, 1 }
  0x45   : > { %s2583_s11 = scalar_select %p737_p1, %s2326_s26, %s739_s7  }
  0x46   : > { %p2585_p5 = por %p750_p2, %p749_p0  ;;  %p2589_p6 = por %p756_p4, %p755_p3 }
  0x47   : > { %p2071_p7 = scmp.ge.s32.totalorder %s2330_s28, 1  ;;  %p871_p8 = scmp.lt.s32.totalorder %s2330_s28, 3 }
  0x49   : > { %p872_p9 = pnand %p2071_p7, %p871_p8 }
  0x4a   : > { %s2889_s5 = sld [smem:[#allocation9_spill]] (!%p872_p9)  ;;  %p950_p10 = scmp.lt.s32.totalorder (!%p872_p9), %s2568_s0, 1 }
  0x4b   : > { %875 = sbr.rel (%p872_p9) target bundleno = 2932 (0xb74), region = 144  ;;  %s2890_s3 = sld [smem:[#allocation11_spill]] (!%p872_p9) }
  0x4c   : > { %s2375_s10 = smov (!%p872_p9), 64   ;;  %s2893_s8 = sld [smem:[#allocation12_spill]] (!%p872_p9) }
  0x4d   : > { %s2908_s4 = sld [smem:[#allocation28_spill]] (!%p872_p9) }
  0x50   : > { %v958_v0 = vld [vmem:[%s2886_s9 + $0x18] sm:$0xff]  ;;  %v957_v1 = vld [vmem:[%s2886_s9 + $0x10] sm:$0xff]  ;;  %v956_v2 = vld [vmem:[%s2886_s9 + $0x8] sm:$0xff]  ;;  %s951_s18 = scalar_select %p950_p10, %s2568_s0, 1  ;;  %vm959_vm0 = vcmask 261120   ;;  %vm983_vm1 = vcmask 518144  }
  0x51   : > { %975 = vmatpush.msra.mxu0 %v958_v0  ;;  %v955_v3 = vld [vmem:[%s2886_s9] sm:$0xff]  ;;  %v2363_v5 = vmov 0.0   ;;  %vm985_vm2 = vcmask 523264   ;;  %v1035_v6 = vld [vmem:[%s2410_s21 + $0x38] sm:$0xff]  ;;  %v1034_v7 = vld [vmem:[%s2410_s21 + $0x30] sm:$0xff]  ;;  %vm1068_vm3 = vcmask 1041408  }
  0x52   : > { %s2073_s1 = sshll.u32 %s951_s18, 3  ;;  %984 = vst.msk [vmem:[#allocation2] sm:$0x7] %vm983_vm1, %v2363_v5  ;;  %1047 = vmatpush.msra.mxu1 %v1035_v6  ;;  %v1033_v9 = vld [vmem:[%s2410_s21 + $0x28] sm:$0xff]  ;;  %v987_v10 = vld [vmem:[%s2400_s13] sm:$0xf] }
  0x53   : > { %976 = vmatpush.msra.mxu0 %v957_v1  ;;  %s953_s7 = scalar_lea.vmem %s2889_s5, %s2073_s1  ;;  %v1032_v11 = vld [vmem:[%s2410_s21 + $0x20] sm:$0xff]  ;;  %v1031_v12 = vld [vmem:[%s2410_s21 + $0x18] sm:$0xff]  ;;  %v989_v13 = vperm.slane %v987_v10, 0  ;;  %v992_v14 = vperm.slane %v987_v10, 1  ;;  %v1030_v15 = vld [vmem:[%s2410_s21 + $0x10] sm:$0xff]  ;;  %v996_v16 = vperm.slane %v987_v10, 2 }
  0x54   : > { %v2602_v4 = vld [vmem:[%s953_s7] sm:$0xff]  ;;  %1048 = vmatpush.msra.mxu1 %v1034_v7  ;;  %v1029_v20 = vld [vmem:[%s2410_s21 + $0x8] sm:$0xff]  ;;  %v1000_v23 = vperm.slane %v987_v10, 3  ;;  %v2364_v35 = vmov 7   ;;  %v2365_v37 = vmov 3   ;;  %v2366_v38 = vmov 2  }
  0x55   : > { %977 = vmatpush.msra.mxu0 %v956_v2  ;;  %v1028_v25 = vld [vmem:[%s2410_s21] sm:$0xff]  ;;  %2181 = vset.pattern.permute.xlu1 %v2364_v35  ;;  %vm1064_vm8 = vcmask 15360   ;;  %v2367_v53 = vmov 4   ;;  %v2368_v54 = vmov 9   ;;  %v2369_v55 = vmov 5   ;;  %s2894_s18 = sld [smem:[#allocation13_spill]] }
  0x56   : > { %1049 = vmatpush.msra.mxu1 %v1033_v9  ;;  %v2196_v30 = vld [vmem:[%s2405_s17] ss:$0 sm:$0xff]  ;;  %2179 = vset.pattern.permute.xlu0 %v2365_v37  ;;  %v2370_v56 = vmov 8   ;;  %v2371_v57 = vmov 6   ;;  %v2372_v5 = vmov 11   ;;  %v2373_v6 = vmov 15  }
  0x57   : > { %978 = vmatpush.msra.mxu0 %v955_v3  ;;  %v1059_v34 = vld [vmem:[%s2415_s25] sm:$0x3]  ;;  %2183 = vset.pattern.permute.xlu2 %v2366_v38  ;;  %vm1122_vm9 = vcmask 1048064   ;;  %s2895_s1 = sld [smem:[#allocation16_spill]] }
  0x58   : > { %2074 = vmatmul.msk.f32.vlgmr.msra.gmra.mxu0 %vm959_vm0, %v2602_v4  ;;  %1050 = vmatpush.msra.mxu1 %v1032_v11  ;;  %v2197_v58 = vld [vmem:[%s2420_s29] ss:$0 sm:$0xff]  ;;  %s2896_s7 = sld [smem:[#allocation15_spill]] }
  0x59   : > { %2076 = vmatpush.msk.msrb.mxu0 %vm1068_vm3, %v1059_v34  ;;  %v1101_v9 = vld [vmem:[%s2890_s3] sm:$0xff]  ;;  %s2901_s3 = sld [smem:[#allocation20_spill]] }
  0x5a   : > { %1051 = vmatpush.msra.mxu1 %v1031_v12  ;;  %v1175_v11 = vperm.slane %v1101_v9, 5  ;;  %v1194_v37 = vperm.slane %v1101_v9, 6  ;;  %s2902_s5 = sld [smem:[#allocation22_spill]] }
  0x5c   : > { %1052 = vmatpush.msra.mxu1 %v1030_v15  ;;  %v1114_v15 = vperm.slane %v1101_v9, 1 }
  0x5e   : > { %1053 = vmatpush.msra.mxu1 %v1029_v20 }
  0x60   : > { %1054 = vmatpush.msra.mxu1 %v1028_v25 }
  0xd5   : > { %v2608_v8 = vpop.f32.mrf.mxu0 }
  0xd6   : > { %986 = vst.msk [vmem:[#allocation2 + $0x3] sm:$0xff] %vm985_vm2, %v2608_v8 }
  0xdd   : > { %v988_v17 = vld [vmem:[#allocation2] sm:$0xff] }
  0xde   : > { %v991_v18 = vld [vmem:[#allocation2 + $0x1] sm:$0xff]  ;;  %v990_v21 = vmul.f32 %v989_v13, %v988_v17  ;;  %v1164_v17 = vperm.slane %v1101_v9, 4 }
  0xdf   : > { %v995_v19 = vld [vmem:[#allocation2 + $0x2] sm:$0xff]  ;;  %v993_v22 = vmul.f32 %v992_v14, %v991_v18  ;;  %v1103_v18 = vperm.slane %v1101_v9, 0 }
  0xe0   : > { %v999_v24 = vld [vmem:[#allocation2 + $0x3] sm:$0xff]  ;;  %v997_v27 = vmul.f32 %v996_v16, %v995_v19  ;;  %v1145_v16 = vperm.slane %v1101_v9, 3  ;;  %v1134_v19 = vperm.slane %v1101_v9, 2 }
  0xe1   : > { %v994_v26 = vadd.f32 %v993_v22, %v990_v21  ;;  %v1001_v29 = vmul.f32 %v1000_v23, %v999_v24  ;;  %v2374_v21 = vmov 13   ;;  %v1205_v22 = vperm.slane %v1101_v9, 7 }
  0xe3   : > { %v998_v28 = vadd.f32 %v997_v27, %v994_v26 }
  0xe5   : > { %v1002_v31 = vadd.f32 %v1001_v29, %v998_v28 }
  0xe7   : > { %v1007_v32 = vadd.f32 %v2196_v30, %v1002_v31 }
  0xe9   : > { %v1008_v33 = vsub.f32 0.0, %v1007_v32 }
  0xeb   : > { %v1009_v36 = vmul.f32 1.442695, %v1008_v33 }
  0xed   : > { %2214 = vpow2.f32 %v1009_v36 }
  0xf3   : > { %v2215_v39 = vpop.eup %2214 }
  0xf4   : > { %v1011_v40 = vadd.f32 1.0, %v2215_v39 }
  0xf6   : > { %2216 = vrcp.f32 %v1011_v40  ;;  %v1023_v44 = vand.u32 2147483648, %v1011_v40  ;;  %v1021_v46 = vand.u32 2147483647, %v1011_v40  ;;  %vm1017_vm5 = vweird.f32 %v1011_v40 }
  0xf8   : > { %v1024_v48 = vor.u32 1.1754944e-38, %v1023_v44  ;;  %vm1022_vm7 = vcmp.eq.f32.partialorder %v1021_v46, 8.507059e+37 }
  0xfc   : > { %v2217_v41 = vpop.eup %2216 }
  0xfd   : > { %v1013_v42 = vmul.f32 %v2217_v41, %v1011_v40  ;;  %vm1018_vm4 = vweird.f32 %v2217_v41 }
  0xfe   : > { %vm1019_vm6 = vmor %vm1017_vm5, %vm1018_vm4 }
  0xff   : > { %v1014_v43 = vsub.f32 1.0, %v1013_v42 }
 0x101   : > { %v1015_v45 = vmul.f32 %v2217_v41, %v1014_v43 }
 0x103   : > { %v1016_v47 = vadd.f32 %v2217_v41, %v1015_v45 }
 0x105   : > { %v1020_v49 = vsel %vm1019_vm6, %v2217_v41, %v1016_v47 }
 0x106   : > { %v1025_v50 = vsel %vm1022_vm7, %v1024_v48, %v1020_v49 }
 0x107   : > { %v2621_v51 = vmul.f32 %v1025_v50, %v1007_v32 }
 0x109   : > { %2075 = vmatmul.msk.f32.vlgmr.msra.gmra.mxu1 %vm985_vm2, %v2621_v51 }
 0x186   : > { %v2625_v52 = vpop.f32.mrf.mxu1 }
 0x187   : > { %1109 = vperm.xlu2 %2183, %v2625_v52   ;;  %1185 = vperm.xlu1 %2181, %v2625_v52  }
 0x188   : > { %1125 = vperm.xlu0 %2179, %v2625_v52   ;;  %2077 = vmatmul.msk.f32.vlgmr.msrb.gmra.mxu0 %vm1064_vm8, %v2625_v52 }
 0x18f   : > { %2184 = vset.pattern.permute.xlu2 %v2367_v53  ;;  %2182 = vset.pattern.permute.xlu1 %v2368_v54 }
 0x190   : > { %2180 = vset.pattern.permute.xlu0 %v2369_v55  ;;  %1140 = vperm.xlu2 %2184, %v2625_v52  }
 0x191   : > { %1215 = vperm.xlu1 %2182, %v2625_v52   ;;  %1155 = vperm.xlu0 %2180, %v2625_v52  }
 0x198   : > { %2186 = vset.pattern.permute.xlu2 %v2370_v56 }
 0x199   : > { %2185 = vset.pattern.permute.xlu1 %v2371_v57  ;;  %1200 = vperm.xlu2 %2186, %v2625_v52  }
 0x19a   : > { %1170 = vperm.xlu1 %2185, %v2625_v52   ;;  %2188 = vset.pattern.permute.xlu0 %v2374_v21 }
 0x1a1   : > { %2187 = vset.pattern.permute.xlu2 %v2372_v5 }
 0x1a2   : > { %2189 = vset.pattern.permute.xlu1 %v2373_v6 }
 0x1e1   : > { %v1110_v2 = vpop.permute.xlu2 %1109 }
 0x1ea   : > { %v1141_v12 = vpop.permute.xlu2 %1140 }
 0x1f3   : > { %v1201_v42 = vpop.permute.xlu2 %1200 }
 0x1f9   : > { %v2637_v0 = vpop.permute.xlu1 %1185 }
 0x1fa   : > { %v1126_v27 = vpop.permute.xlu0 %1125 }
 0x203   : > { %v2639_v7 = vpop.permute.xlu1 %1215  ;;  %v1156_v57 = vpop.permute.xlu0 %1155 }
 0x205   : > { %v1089_v59 = vpop.f32.mrf.mxu0 }
 0x206   : > { %v1090_v60 = vadd.f32 %v2197_v58, %v1089_v59 }
 0x208   : > { %v1093_v61 = vand.u32 2147483647, %v1090_v60  ;;  %v1092_v13 = vmax.f32 %v1090_v60, 0.0 }
 0x20a   : > { %v1094_v62 = vsub.f32 0.0, %v1093_v61 }
 0x20c   : > { %v1095_v63 = vmul.f32 1.442695, %v1094_v62  ;;  %v1171_v28 = vpop.permute.xlu1 %1170 }
 0x20e   : > { %2218 = vpow2.f32 %v1095_v63  ;;  %v2376_v63 = vmov 17  }
 0x214   : > { %v2219_v1 = vpop.eup %2218 }
 0x215   : > { %v1097_v3 = vadd.f32 1.0, %v2219_v1  ;;  %v2377_v1 = vmov 10  }
 0x217   : > { %2220 = vlog2.f32 %v1097_v3  ;;  %v2379_v3 = vmov 14  }
 0x21d   : > { %v2221_v10 = vpop.eup %2220 }
 0x21e   : > { %v1099_v14 = vmul.f32 0.6931472, %v2221_v10 }
 0x220   : > { %v1100_v20 = vadd.f32 %v1099_v14, %v1092_v13  ;;  %v1228_v14 = vlaneseq }
 0x222   : > { %v1102_v23 = vmul.f32 %v1100_v20, %v2621_v51  ;;  %v1176_v24 = vmul.f32 %v1175_v11, %v1100_v20  ;;  %v1115_v25 = vmul.f32 %v1114_v15, %v1100_v20  ;;  %v1146_v26 = vmul.f32 %v1145_v16, %v1100_v20 }
 0x223   : > { %v1165_v29 = vmul.f32 %v1164_v17, %v1100_v20  ;;  %v1104_v30 = vmul.f32 %v1103_v18, %v1100_v20  ;;  %v1135_v31 = vmul.f32 %v1134_v19, %v1100_v20  ;;  %v1206_v38 = vmul.f32 %v1205_v22, %v1100_v20  ;;  %v2198_v18 = vld [vmem:[%s2893_s8] ss:$0 sm:$0xff]  ;;  %s2903_s8 = sld [smem:[#allocation25_spill]] }
 0x224   : > { %v1173_v32 = vmul.f32 %v1171_v28, %v1102_v23  ;;  %v1128_v33 = vmul.f32 %v1126_v27, %v1102_v23  ;;  %v1177_v34 = vmul.f32 1.442695, %v1176_v24  ;;  %v1116_v35 = vmul.f32 1.442695, %v1115_v25 }
 0x225   : > { %v1147_v36 = vmul.f32 1.442695, %v1146_v26  ;;  %v1166_v39 = vmul.f32 1.442695, %v1165_v29  ;;  %v1143_v40 = vmul.f32 %v1141_v12, %v1102_v23  ;;  %v1112_v41 = vmul.f32 %v1110_v2, %v1102_v23 }
 0x226   : > { %1174 = vst.msk [vmem:[#allocation4 + $0x10] sm:$0xff] %vm985_vm2, %v1173_v32  ;;  %1130 = vrot.lane.b32.xlu1 %v1128_v33, %s2375_s10  ;;  %2222 = vpow2.f32 %v1177_v34  ;;  %v1105_v43 = vmul.f32 1.442695, %v1104_v30  ;;  %v1136_v44 = vmul.f32 1.442695, %v1135_v31  ;;  %v1195_v45 = vmul.f32 %v1194_v37, %v1100_v20 }
 0x227   : > { %2224 = vpow2.f32 %v1116_v35  ;;  %1144 = vst.msk [vmem:[#allocation4 + $0x8] sm:$0xff] %vm985_vm2, %v1143_v40  ;;  %v1203_v46 = vmul.f32 %v1201_v42, %v1102_v23  ;;  %v1207_v47 = vmul.f32 1.442695, %v1206_v38  ;;  %v1158_v59 = vmul.f32 %v1156_v57, %v1102_v23 }
 0x228   : > { %2226 = vpow2.f32 %v1147_v36  ;;  %1113 = vst.msk [vmem:[#allocation4] sm:$0xff] %vm985_vm2, %v1112_v41  ;;  %v1196_v48 = vmul.f32 1.442695, %v1195_v45  ;;  %v1218_v61 = vmul.f32 %v2639_v7, %v1102_v23  ;;  %v1188_v62 = vmul.f32 %v2637_v0, %v1102_v23 }
 0x229   : > { %2228 = vpow2.f32 %v1166_v39  ;;  %1204 = vst.msk [vmem:[#allocation4 + $0x18] sm:$0xff] %vm985_vm2, %v1203_v46  ;;  %v2378_v2 = vmov 12   ;;  %vm2676_vm10 = vcmp.lt.s32.totalorder %v1228_v14, 512  ;;  %v1370_v20 = vsub.f32 0.0, %v2608_v8 }
 0x22a   : > { %2230 = vpow2.f32 %v1105_v43  ;;  %v2380_v31 = vmov 16  }
 0x22b   : > { %2232 = vpow2.f32 %v1136_v44  ;;  %v1371_v25 = vmul.f32 1.442695, %v1370_v20  ;;  %v1400_v20 = vld [vmem:[%s2435_s14 + $0x28] sm:$0xff] }
 0x22c   : > { %v2223_v49 = vpop.eup %2222  ;;  %2234 = vpow2.f32 %v1196_v48 }
 0x22d   : > { %v2225_v50 = vpop.eup %2224  ;;  %1180 = vrot.lane.b32.xlu2 %v2223_v49, %s2375_s10  ;;  %2236 = vpow2.f32 %v1207_v47 }
 0x22e   : > { %v2227_v53 = vpop.eup %2226  ;;  %1119 = vrot.lane.b32.xlu0 %v2225_v50, %s2375_s10  ;;  %2238 = vpow2.f32 %v1371_v25 }
 0x22f   : > { %1150 = vrot.lane.b32.xlu1 %v2227_v53, %s2375_s10  ;;  %v2229_v54 = vpop.eup %2228 }
 0x230   : > { %v2231_v55 = vpop.eup %2230  ;;  %1168 = vst.msk [vmem:[#allocation3 + $0x10] sm:$0xff] %vm985_vm2, %v2229_v54 }
 0x231   : > { %v2233_v56 = vpop.eup %2232  ;;  %1107 = vst.msk [vmem:[#allocation3] sm:$0xff] %vm985_vm2, %v2231_v55 }
 0x232   : > { %v2235_v58 = vpop.eup %2234  ;;  %1138 = vst.msk [vmem:[#allocation3 + $0x8] sm:$0xff] %vm985_vm2, %v2233_v56 }
 0x233   : > { %1198 = vst.msk [vmem:[#allocation3 + $0x18] sm:$0xff] %vm985_vm2, %v2235_v58  ;;  %v2237_v60 = vpop.eup %2236 }
 0x234   : > { %v2239_v37 = vpop.eup %2238 }
 0x235   : > { %1160 = vrot.lane.b32.xlu2 %v1158_v59, %s2375_s10  ;;  %v1373_v41 = vadd.f32 1.0, %v2239_v37 }
 0x236   : > { %1210 = vrot.lane.b32.xlu0 %v2237_v60, %s2375_s10 }
 0x237   : > { %1220 = vrot.lane.b32.xlu1 %v1218_v61, %s2375_s10  ;;  %2240 = vrcp.f32 %v1373_v41  ;;  %vm1379_vm12 = vweird.f32 %v1373_v41 }
 0x23d   : > { %1313 = vperm.xlu2 %2187, %v2625_v52   ;;  %v2241_v55 = vpop.eup %2240 }
 0x23e   : > { %1190 = vrot.lane.b32.xlu0 %v1188_v62, %s2375_s10  ;;  %v1375_v56 = vmul.f32 %v2241_v55, %v1373_v41  ;;  %vm1380_vm11 = vweird.f32 %v2241_v55 }
 0x23f   : > { %1345 = vperm.xlu1 %2189, %v2625_v52   ;;  %vm1381_vm13 = vmor %vm1379_vm12, %vm1380_vm11 }
 0x240   : > { %v1376_v57 = vsub.f32 1.0, %v1375_v56 }
 0x245   : > { %2190 = vset.pattern.permute.xlu2 %v2376_v63 }
 0x246   : > { %1329 = vperm.xlu0 %2188, %v2625_v52   ;;  %1361 = vperm.xlu2 %2190, %v2625_v52  }
 0x247   : > { %2191 = vset.pattern.permute.xlu1 %v2377_v1 }
 0x248   : > { %1307 = vperm.xlu1 %2191, %v2625_v52  }
 0x24e   : > { %2192 = vset.pattern.permute.xlu0 %v2378_v2  ;;  %2193 = vset.pattern.permute.xlu2 %v2379_v3  ;;  %v1377_v3 = vmul.f32 %v2241_v55, %v1376_v57 }
 0x24f   : > { %1323 = vperm.xlu0 %2192, %v2625_v52   ;;  %1339 = vperm.xlu2 %2193, %v2625_v52  }
 0x257   : > { %2195 = vset.pattern.permute.xlu0 %v2376_v63  ;;  %2194 = vset.pattern.permute.xlu2 %v2380_v31  ;;  %v1395_v31 = vld [vmem:[%s2435_s14] sm:$0xff] }
 0x287   : > { %v1181_v0 = vpop.permute.xlu2 %1180 }
 0x288   : > { %1183 = vst.msk [vmem:[#allocation3 + $0x10] sm:$0xff] %vm1122_vm9, %v1181_v0 }
 0x28f   : > { %v1161_v5 = vpop.permute.xlu2 %1160 }
 0x290   : > { %1163 = vst.msk [vmem:[#allocation4 + $0x8] sm:$0xff] %vm1122_vm9, %v1161_v5  ;;  %v1378_v5 = vadd.f32 %v2241_v55, %v1377_v3  ;;  %v1465_v3 = vld [vmem:[%s2450_s30] sm:$0xff] }
 0x297   : > { %v1314_v53 = vpop.permute.xlu2 %1313 }
 0x298   : > { %v1131_v6 = vpop.permute.xlu1 %1130 }
 0x299   : > { %1133 = vst.msk [vmem:[#allocation4] sm:$0xff] %vm1122_vm9, %v1131_v6  ;;  %v1385_v6 = vand.u32 2147483648, %v1373_v41 }
 0x2a0   : > { %v1120_v7 = vpop.permute.xlu0 %1119  ;;  %v1362_v61 = vpop.permute.xlu2 %1361 }
 0x2a1   : > { %1123 = vst.msk [vmem:[#allocation3] sm:$0xff] %vm1122_vm9, %v1120_v7  ;;  %v1151_v9 = vpop.permute.xlu1 %1150 }
 0x2a2   : > { %1153 = vst.msk [vmem:[#allocation3 + $0x8] sm:$0xff] %vm1122_vm9, %v1151_v9  ;;  %v1383_v9 = vand.u32 2147483647, %v1373_v41 }
 0x2a4   : > { %vm1384_vm14 = vcmp.eq.f32.partialorder %v1383_v9, 8.507059e+37 }
 0x2a8   : > { %v1211_v10 = vpop.permute.xlu0 %1210 }
 0x2a9   : > { %1213 = vst.msk [vmem:[#allocation3 + $0x18] sm:$0xff] %vm1122_vm9, %v1211_v10  ;;  %v1221_v11 = vpop.permute.xlu1 %1220 }
 0x2aa   : > { %1223 = vst.msk [vmem:[#allocation4 + $0x18] sm:$0xff] %vm1122_vm9, %v1221_v11  ;;  %v1382_v11 = vsel %vm1381_vm13, %v2241_v55, %v1378_v5 }
 0x2b0   : > { %v1191_v12 = vpop.permute.xlu0 %1190  ;;  %v1224_v13 = vld [vmem:[#allocation3] ss:$8 sm:$0xf]  ;;  %v1235_v19 = vld [vmem:[#allocation3 + $0x1] ss:$8 sm:$0xf] }
 0x2b1   : > { %1193 = vst.msk [vmem:[#allocation4 + $0x10] sm:$0xff] %vm1122_vm9, %v1191_v12  ;;  %v1225_v15 = vmul.f32 0.0, %v1224_v13  ;;  %v1244_v24 = vld [vmem:[#allocation3 + $0x2] ss:$8 sm:$0xf]  ;;  %v1346_v7 = vpop.permute.xlu1 %1345  ;;  %v1386_v12 = vor.u32 1.1754944e-38, %v1385_v6 }
 0x2b2   : > { %v1253_v29 = vld [vmem:[#allocation3 + $0x3] ss:$8 sm:$0xf]  ;;  %v1262_v34 = vld [vmem:[#allocation3 + $0x4] ss:$8 sm:$0xf] }
 0x2b3   : > { %v1271_v39 = vld [vmem:[#allocation3 + $0x5] ss:$8 sm:$0xf]  ;;  %v1280_v44 = vld [vmem:[#allocation3 + $0x6] ss:$8 sm:$0xf]  ;;  %v1387_v13 = vsel %vm1384_vm14, %v1386_v12, %v1382_v11 }
 0x2b4   : > { %v1289_v48 = vld [vmem:[#allocation3 + $0x7] ss:$8 sm:$0xf]  ;;  %v1389_v14 = vmul.f32 %v1387_v13, %v2608_v8 }
 0x2b8   : > { %v1226_v16 = vld [vmem:[#allocation4] ss:$8 sm:$0xf]  ;;  %v1238_v22 = vld [vmem:[#allocation4 + $0x1] ss:$8 sm:$0xf]  ;;  %v1330_v58 = vpop.permute.xlu0 %1329 }
 0x2b9   : > { %v1227_v17 = vadd.f32 %v1226_v16, %v1225_v15  ;;  %v1247_v27 = vld [vmem:[#allocation4 + $0x2] ss:$8 sm:$0xf]  ;;  %v1256_v32 = vld [vmem:[#allocation4 + $0x3] ss:$8 sm:$0xf]  ;;  %v1340_v15 = vpop.permute.xlu2 %1339 }
 0x2ba   : > { %v1265_v36 = vld [vmem:[#allocation4 + $0x4] ss:$8 sm:$0xf]  ;;  %v1274_v42 = vld [vmem:[#allocation4 + $0x5] ss:$8 sm:$0xf] }
 0x2bb   : > { %v1236_v21 = vmul.f32 %v1235_v19, %v1227_v17  ;;  %1232 = vst.msk [vmem:[#allocation5] ss:$8 sm:$0xf] %vm2676_vm10, %v1227_v17  ;;  %v1283_v46 = vld [vmem:[#allocation4 + $0x6] ss:$8 sm:$0xf]  ;;  %v1308_v19 = vpop.permute.xlu1 %1307 }
 0x2bc   : > { %v1292_v50 = vld [vmem:[#allocation4 + $0x7] ss:$8 sm:$0xf] }
 0x2bd   : > { %v1239_v23 = vadd.f32 %v1238_v22, %v1236_v21  ;;  %v1402_v16 = vld [vmem:[%s2435_s14 + $0x38] sm:$0xff]  ;;  %v1401_v17 = vld [vmem:[%s2435_s14 + $0x30] sm:$0xff] }
 0x2be   : > { %1414 = vmatpush.msra.mxu2 %v1402_v16 }
 0x2bf   : > { %v1245_v26 = vmul.f32 %v1244_v24, %v1239_v23  ;;  %1241 = vst.msk [vmem:[#allocation5 + $0x1] ss:$8 sm:$0xf] %vm2676_vm10, %v1239_v23 }
 0x2c0   : > { %1415 = vmatpush.msra.mxu2 %v1401_v17 }
 0x2c1   : > { %v1248_v28 = vadd.f32 %v1247_v27, %v1245_v26  ;;  %v1324_v22 = vpop.permute.xlu0 %1323  ;;  %v1399_v26 = vld [vmem:[%s2435_s14 + $0x20] sm:$0xff]  ;;  %v1398_v27 = vld [vmem:[%s2435_s14 + $0x18] sm:$0xff] }
 0x2c2   : > { %1416 = vmatpush.msra.mxu2 %v1400_v20 }
 0x2c3   : > { %v1254_v30 = vmul.f32 %v1253_v29, %v1248_v28  ;;  %1250 = vst.msk [vmem:[#allocation5 + $0x2] ss:$8 sm:$0xf] %vm2676_vm10, %v1248_v28  ;;  %v1397_v29 = vld [vmem:[%s2435_s14 + $0x10] sm:$0xff] }
 0x2c4   : > { %1417 = vmatpush.msra.mxu2 %v1399_v26 }
 0x2c5   : > { %v1257_v33 = vadd.f32 %v1256_v32, %v1254_v30  ;;  %v1396_v30 = vld [vmem:[%s2435_s14 + $0x8] sm:$0xff] }
 0x2c6   : > { %1418 = vmatpush.msra.mxu2 %v1398_v27 }
 0x2c7   : > { %v1263_v35 = vmul.f32 %v1262_v34, %v1257_v33  ;;  %1259 = vst.msk [vmem:[#allocation5 + $0x3] ss:$8 sm:$0xf] %vm2676_vm10, %v1257_v33 }
 0x2c8   : > { %1419 = vmatpush.msra.mxu2 %v1397_v29 }
 0x2c9   : > { %v1266_v38 = vadd.f32 %v1265_v36, %v1263_v35 }
 0x2ca   : > { %1420 = vmatpush.msra.mxu2 %v1396_v30 }
 0x2cb   : > { %v1272_v40 = vmul.f32 %v1271_v39, %v1266_v38  ;;  %1268 = vst.msk [vmem:[#allocation5 + $0x4] ss:$8 sm:$0xf] %vm2676_vm10, %v1266_v38 }
 0x2cc   : > { %1421 = vmatpush.msra.mxu2 %v1395_v31 }
 0x2cd   : > { %v1275_v43 = vadd.f32 %v1274_v42, %v1272_v40 }
 0x2cf   : > { %v1281_v45 = vmul.f32 %v1280_v44, %v1275_v43  ;;  %1277 = vst.msk [vmem:[#allocation5 + $0x5] ss:$8 sm:$0xf] %vm2676_vm10, %v1275_v43 }
 0x2d1   : > { %v1284_v47 = vadd.f32 %v1283_v46, %v1281_v45 }
 0x2d3   : > { %v1290_v49 = vmul.f32 %v1289_v48, %v1284_v47  ;;  %1286 = vst.msk [vmem:[#allocation5 + $0x6] ss:$8 sm:$0xf] %vm2676_vm10, %v1284_v47  ;;  %v2381_v47 = vmov 32.0  }
 0x2d4   : > { %2242 = vrcp.f32 %v2381_v47 }
 0x2d5   : > { %v1293_v54 = vadd.f32 %v1292_v50, %v1290_v49 }
 0x2d7   : > { %1295 = vst.msk [vmem:[#allocation5 + $0x7] ss:$8 sm:$0xf] %vm2676_vm10, %v1293_v54 }
 0x2da   : > { %v2243_v48 = vpop.eup %2242 }
 0x2db   : > { %v1432_v49 = vmul.f32 32.0, %v2243_v48  ;;  %vm1436_vm15 = vweird.f32 %v2243_v48 }
 0x2dd   : > { %v1433_v50 = vsub.f32 1.0, %v1432_v49 }
 0x2de   : > { %v1298_v59 = vld [vmem:[#allocation5 + $0x8] sm:$0xff]  ;;  %v1297_v60 = vld [vmem:[#allocation5] sm:$0xff]  ;;  %v1300_v63 = vld [vmem:[#allocation5 + $0x18] sm:$0xff] }
 0x2df   : > { %v1332_v62 = vmul.f32 %v1330_v58, %v1298_v59  ;;  %v1316_v1 = vmul.f32 %v1314_v53, %v1297_v60  ;;  %v1364_v2 = vmul.f32 %v1362_v61, %v1300_v63  ;;  %v1299_v0 = vld [vmem:[#allocation5 + $0x10] sm:$0xff]  ;;  %v1310_v21 = vmul.f32 %v1308_v19, %v1297_v60  ;;  %v1468_v60 = vld [vmem:[%s2450_s30 + $0x18] sm:$0xff] }
 0x2e0   : > { %v1348_v10 = vmul.f32 %v1346_v7, %v1299_v0  ;;  %v1326_v24 = vmul.f32 %v1324_v22, %v1298_v59  ;;  %v1342_v33 = vmul.f32 %v1340_v15, %v1299_v0  ;;  %v1434_v53 = vmul.f32 %v2243_v48, %v1433_v50  ;;  %v1499_v61 = vld [vmem:[%s2885_s12 + $0x18] sm:$0xff]  ;;  %1488 = vmatpush.msrb.mxu2 %v1468_v60  ;;  %v1496_v0 = vld [vmem:[%s2885_s12] sm:$0xff] }
 0x2e1   : > { %1334 = vrot.lane.b32.xlu1 %v1332_v62, %s2375_s10  ;;  %1366 = vrot.lane.b32.xlu0 %v1364_v2, %s2375_s10  ;;  %v1467_v62 = vld [vmem:[%s2450_s30 + $0x10] sm:$0xff]  ;;  %v1497_v2 = vld [vmem:[%s2885_s12 + $0x8] sm:$0xff] }
 0x2e2   : > { %1318 = vrot.lane.b32.xlu2 %v1316_v1, %s2375_s10  ;;  %v1435_v54 = vadd.f32 %v2243_v48, %v1434_v53  ;;  %1516 = vmatpush.msra.mxu0 %v1499_v61  ;;  %v1466_v1 = vld [vmem:[%s2450_s30 + $0x8] sm:$0xff]  ;;  %v2199_v15 = vld [vmem:[%s2440_s19] ss:$0 sm:$0xff] }
 0x2e3   : > { %1489 = vmatpush.msrb.mxu2 %v1467_v62 }
 0x2e4   : > { %v2717_v55 = vsel %vm1436_vm15, %v2243_v48, %v1435_v54 }
 0x2e5   : > { %1490 = vmatpush.msrb.mxu2 %v1466_v1 }
 0x2e7   : > { %1491 = vmatpush.msrb.mxu2 %v1465_v3 }
 0x2e9   : > { %1350 = vrot.lane.b32.xlu1 %v1348_v10, %s2375_s10 }
 0x2ea   : > { %1355 = vperm.xlu2 %2194, %v2625_v52   ;;  %v1305_v52 = vmul.f32 %v2198_v18, %v2621_v51  ;;  %v2200_v18 = vld [vmem:[%s2445_s24] ss:$0 sm:$0xff] }
 0x2ec   : > { %v1311_v8 = vadd.f32 %v1310_v21, %v1305_v52  ;;  %v2202_v52 = vld [vmem:[%s2894_s18] ss:$0 sm:$0xff]  ;;  %s2898_s18 = sld [smem:[#allocation21_spill]] }
 0x2f1   : > { %1391 = vrot.lane.b32.xlu1 %v1389_v14, %s2375_s10  ;;  %s2897_s10 = sld [smem:[#allocation17_spill]] }
 0x33c   : > { %v1319_v23 = vpop.permute.xlu2 %1318 }
 0x33d   : > { %v1321_v25 = vadd.f32 %v1319_v23, %v1311_v8 }
 0x33f   : > { %v1327_v28 = vadd.f32 %v1326_v24, %v1321_v25 }
 0x344   : > { %v1356_v35 = vpop.permute.xlu2 %1355 }
 0x345   : > { %v1358_v37 = vmul.f32 %v1356_v35, %v1300_v63  ;;  %v1498_v63 = vld [vmem:[%s2885_s12 + $0x10] sm:$0xff] }
 0x346   : > { %1517 = vmatpush.msra.mxu0 %v1498_v63 }
 0x348   : > { %1518 = vmatpush.msra.mxu0 %v1497_v2 }
 0x34a   : > { %1519 = vmatpush.msra.mxu0 %v1496_v0 }
 0x353   : > { %v1335_v32 = vpop.permute.xlu1 %1334  ;;  %v1367_v40 = vpop.permute.xlu0 %1366 }
 0x354   : > { %v1337_v51 = vadd.f32 %v1335_v32, %v1327_v28 }
 0x356   : > { %v1343_v34 = vadd.f32 %v1342_v33, %v1337_v51 }
 0x35b   : > { %v1351_v36 = vpop.permute.xlu1 %1350 }
 0x35c   : > { %v1353_v38 = vadd.f32 %v1351_v36, %v1343_v34 }
 0x35e   : > { %v1359_v39 = vadd.f32 %v1358_v37, %v1353_v38 }
 0x360   : > { %v1369_v41 = vadd.f32 %v1367_v40, %v1359_v39 }
 0x363   : > { %v1392_v42 = vpop.permute.xlu1 %1391 }
 0x364   : > { %v1394_v43 = vmul.f32 %v1392_v42, %v1369_v41 }
 0x366   : > { %2078 = vmatmul.msk.f32.vlgmr.msra.gmra.mxu2 %vm985_vm2, %v1394_v43 }
 0x3e9   : > { %v1423_v44 = vpop.f32.mrf.mxu2 }
 0x3ea   : > { %v1424_v45 = vadd.f32 %v1423_v44, %v2602_v4 }
 0x3ec   : > { %v1428_v46 = vsel %vm959_vm0, %v1424_v45, 0.0 }
 0x3ed   : > { %1429 = vadd.xlane.f32.xlu2 %v1428_v46 }
 0x460   : > { %v1430_v4 = vpop.xlane.xlu2 %1429 }
 0x461   : > { %v1438_v56 = vmul.f32 %v2717_v55, %v1430_v4 }
 0x463   : > { %v1439_v57 = vsub.f32 %v1424_v45, %v1438_v56 }
 0x465   : > { %v1440_v58 = vmul.f32 %v1439_v57, %v1439_v57 }
 0x467   : > { %v1441_v59 = vsel %vm959_vm0, %v1440_v58, 0.0 }
 0x468   : > { %1442 = vadd.xlane.f32.xlu0 %v1441_v59 }
 0x4db   : > { %v1443_v5 = vpop.xlane.xlu0 %1442 }
 0x4dc   : > { %v1444_v6 = vmul.f32 %v1443_v5, %v2717_v55 }
 0x4de   : > { %v1445_v7 = vadd.f32 1e-12, %v1444_v6 }
 0x4e0   : > { %2244 = vrsqrt.f32 %v1445_v7  ;;  %vm1452_vm2 = vweird.f32 %v1445_v7 }
 0x4e6   : > { %v2245_v9 = vpop.eup %2244 }
 0x4e7   : > { %v1447_v10 = vmul.f32 %v2245_v9, %v1445_v7  ;;  %vm1453_vm1 = vweird.f32 %v2245_v9 }
 0x4e8   : > { %vm1454_vm3 = vmor %vm1452_vm2, %vm1453_vm1 }
 0x4e9   : > { %v1448_v11 = vmul.f32 %v2245_v9, %v1447_v10 }
 0x4eb   : > { %v1449_v12 = vmul.f32 0.5, %v1448_v11 }
 0x4ed   : > { %v1450_v13 = vsub.f32 1.5, %v1449_v12 }
 0x4ef   : > { %v1451_v14 = vmul.f32 %v2245_v9, %v1450_v13 }
 0x4f1   : > { %v1455_v16 = vsel %vm1454_vm3, %v2245_v9, %v1451_v14 }
 0x4f2   : > { %v1456_v17 = vmul.f32 %v1455_v16, %v1439_v57 }
 0x4f4   : > { %v1460_v19 = vmul.f32 %v2199_v15, %v1456_v17 }
 0x4f6   : > { %v2732_v20 = vadd.f32 %v2200_v18, %v1460_v19 }
 0x4f8   : > { %2079 = vmatmul.msk.f32.vlgmr.msrb.gmra.mxu2 %vm959_vm0, %v2732_v20  ;;  %2080 = vmatmul.msk.f32.vlgmr.msra.gmra.mxu0 %vm959_vm0, %v2732_v20  ;;  %v1718_v21 = vsel %vm959_vm0, %v2732_v20, 0.0 }
 0x4f9   : > { %1719 = vadd.xlane.f32.xlu0 %v1718_v21 }
 0x56c   : > { %v1720_v8 = vpop.xlane.xlu0 %1719 }
 0x56d   : > { %v1721_v23 = vmul.f32 %v1720_v8, %v2717_v55 }
 0x56f   : > { %v2743_v26 = vsub.f32 %v2732_v20, %v1721_v23 }
 0x571   : > { %v1723_v28 = vmul.f32 %v2743_v26, %v2743_v26 }
 0x573   : > { %v1724_v29 = vsel %vm959_vm0, %v1723_v28, 0.0 }
 0x57b   : > { %v1493_v22 = vpop.f32.mrf.mxu2 }
 0x57c   : > { %v1494_v24 = vadd.f32 %v2202_v52, %v1493_v22 }
 0x57e   : > { %v1524_v25 = vmul.f32 %v1494_v24, %v1494_v24 }
 0x580   : > { %v1525_v27 = vsel %vm959_vm0, %v1524_v25, 0.0 }
 0x581   : > { %1526 = vadd.xlane.f32.xlu1 %v1525_v27 }
 0x589   : > { %1725 = vadd.xlane.f32.xlu1 %v1724_v29 }
 0x5f4   : > { %v1527_v30 = vpop.xlane.xlu1 %1526 }
 0x5f5   : > { %2246 = vrsqrt.f32 %v1527_v30  ;;  %vm1535_vm4 = vcmp.eq.f32.partialorder %v1527_v30, inf  ;;  %v1538_v37 = vand.u32 2147483648, %v1527_v30  ;;  %vm1537_vm5 = vcmp.eq.f32.partialorder %v1527_v30, 0.0 }
 0x5fb   : > { %v2247_v31 = vpop.eup %2246 }
 0x5fc   : > { %v1529_v32 = vmul.f32 %v2247_v31, %v1527_v30 }
 0x5fe   : > { %v1530_v33 = vmul.f32 %v2247_v31, %v1529_v32 }
 0x600   : > { %v1531_v51 = vmul.f32 0.5, %v1530_v33  ;;  %v1521_v33 = vpop.f32.mrf.mxu0 }
 0x602   : > { %v1532_v34 = vsub.f32 1.5, %v1531_v51 }
 0x604   : > { %v1533_v35 = vmul.f32 %v2247_v31, %v1532_v34  ;;  %v2201_v31 = vld [vmem:[%s2896_s7] ss:$0 sm:$0xff]  ;;  %s2900_s7 = sld [smem:[#allocation18_spill]] }
 0x605   : > { %v2754_v34 = vadd.f32 %v2201_v31, %v1521_v33 }
 0x606   : > { %v1534_v36 = vmul.f32 %v1533_v35, %v1527_v30 }
 0x608   : > { %v1536_v38 = vsel %vm1535_vm4, %v1527_v30, %v1534_v36  ;;  %v2203_v30 = vld [vmem:[%s2895_s1] ss:$0 sm:$0xff]  ;;  %v1556_v36 = vmul.f32 %v2754_v34, %v2754_v34  ;;  %s2899_s1 = sld [smem:[#allocation19_spill]] }
 0x609   : > { %v1539_v39 = vsel %vm1537_vm5, %v1538_v37, %v1536_v38 }
 0x60a   : > { %v1540_v40 = vmax.f32 %v1539_v39, 1e-12  ;;  %v1557_v37 = vsel %vm959_vm0, %v1556_v36, 0.0 }
 0x60c   : > { %2248 = vrcp.f32 %v1540_v40  ;;  %v1552_v44 = vand.u32 2147483648, %v1540_v40  ;;  %v1550_v46 = vand.u32 2147483647, %v1540_v40  ;;  %vm1546_vm7 = vweird.f32 %v1540_v40 }
 0x60e   : > { %v1553_v48 = vor.u32 1.1754944e-38, %v1552_v44  ;;  %vm1551_vm9 = vcmp.eq.f32.partialorder %v1550_v46, 8.507059e+37 }
 0x612   : > { %v2249_v41 = vpop.eup %2248 }
 0x613   : > { %v1542_v42 = vmul.f32 %v2249_v41, %v1540_v40  ;;  %vm1547_vm6 = vweird.f32 %v2249_v41 }
 0x614   : > { %vm1548_vm8 = vmor %vm1546_vm7, %vm1547_vm6 }
 0x615   : > { %v1543_v43 = vsub.f32 1.0, %v1542_v42 }
 0x617   : > { %v1544_v45 = vmul.f32 %v2249_v41, %v1543_v43 }
 0x619   : > { %v1545_v47 = vadd.f32 %v2249_v41, %v1544_v45 }
 0x61b   : > { %v1549_v49 = vsel %vm1548_vm8, %v2249_v41, %v1545_v47 }
 0x61c   : > { %v1554_v50 = vsel %vm1551_vm9, %v1553_v48, %v1549_v49 }
 0x61d   : > { %v1555_v53 = vmul.f32 %v1554_v50, %v1494_v24 }
 0x61f   : > { %v1589_v54 = vmul.f32 0.70710677, %v1555_v53  ;;  %v1588_v28 = vmul.f32 0.5, %v1555_v53 }
 0x621   : > { %v1590_v4 = vmul.f32 %v1589_v54, %v1589_v54 }
 0x623   : > { %v1591_v56 = vmin.f32 %v1590_v4, 16.0 }
 0x625   : > { %v1592_v57 = vmul.f32 2.1237322e-06, %v1591_v56  ;;  %v1603_v58 = vmul.f32 3.8918573e-05, %v1591_v56 }
 0x627   : > { %v1593_v59 = vadd.f32 0.00028619796, %v1592_v57  ;;  %v1604_v60 = vadd.f32 0.001143296, %v1603_v58 }
 0x629   : > { %v1594_v61 = vmul.f32 %v1593_v59, %v1591_v56  ;;  %v1605_v62 = vmul.f32 %v1604_v60, %v1591_v56 }
 0x62b   : > { %v1606_v63 = vadd.f32 0.014752088, %v1605_v62  ;;  %v1595_v1 = vadd.f32 0.0036580483, %v1594_v61 }
 0x62d   : > { %v1607_v2 = vmul.f32 %v1606_v63, %v1591_v56  ;;  %v1596_v0 = vmul.f32 %v1595_v1, %v1591_v56 }
 0x62f   : > { %v1608_v3 = vadd.f32 0.112945676, %v1607_v2  ;;  %v1597_v7 = vadd.f32 0.05243302, %v1596_v0 }
 0x631   : > { %v1609_v5 = vmul.f32 %v1608_v3, %v1591_v56  ;;  %v1598_v11 = vmul.f32 %v1597_v7, %v1591_v56 }
 0x633   : > { %v1610_v6 = vadd.f32 0.4994258, %v1609_v5  ;;  %v1599_v12 = vadd.f32 0.18741608, %v1598_v11  ;;  %v1687_v11 = vld [vmem:[%s2897_s10 + $0x10] sm:$0xff] }
 0x635   : > { %v1611_v9 = vmul.f32 %v1610_v6, %v1591_v56  ;;  %v1600_v14 = vmul.f32 %v1599_v12, %v1591_v56  ;;  %v1686_v12 = vld [vmem:[%s2897_s10 + $0x8] sm:$0xff] }
 0x637   : > { %v1612_v10 = vadd.f32 1.0, %v1611_v9  ;;  %v1601_v18 = vadd.f32 1.1283791, %v1600_v14  ;;  %v1752_v14 = vld [vmem:[%s2898_s18 + $0x18] sm:$0xff] }
 0x638   : > { %1772 = vmatpush.msrb.mxu0 %v1752_v14 }
 0x639   : > { %2250 = vrcp.f32 %v1612_v10  ;;  %v1624_v17 = vand.u32 2147483648, %v1612_v10  ;;  %v1622_v21 = vand.u32 2147483647, %v1612_v10  ;;  %vm1618_vm11 = vweird.f32 %v1612_v10 }
 0x63a   : > { %v1602_v22 = vmul.f32 %v1601_v18, %v1589_v54 }
 0x63b   : > { %v1625_v8 = vor.u32 1.1754944e-38, %v1624_v17  ;;  %vm1623_vm13 = vcmp.eq.f32.partialorder %v1622_v21, 8.507059e+37 }
 0x63f   : > { %v2251_v13 = vpop.eup %2250 }
 0x640   : > { %v1614_v15 = vmul.f32 %v2251_v13, %v1612_v10  ;;  %vm1619_vm10 = vweird.f32 %v2251_v13  ;;  %v1688_v10 = vld [vmem:[%s2897_s10 + $0x18] sm:$0xff] }
 0x641   : > { %vm1620_vm12 = vmor %vm1618_vm11, %vm1619_vm10  ;;  %1708 = vmatpush.msra.mxu2 %v1688_v10 }
 0x642   : > { %v1615_v16 = vsub.f32 1.0, %v1614_v15  ;;  %v1751_v15 = vld [vmem:[%s2898_s18 + $0x10] sm:$0xff] }
 0x643   : > { %1709 = vmatpush.msra.mxu2 %v1687_v11  ;;  %1773 = vmatpush.msrb.mxu0 %v1751_v15 }
 0x644   : > { %v1616_v19 = vmul.f32 %v2251_v13, %v1615_v16 }
 0x645   : > { %1710 = vmatpush.msra.mxu2 %v1686_v12 }
 0x646   : > { %v1617_v52 = vadd.f32 %v2251_v13, %v1616_v19 }
 0x648   : > { %v1621_v23 = vsel %vm1620_vm12, %v2251_v13, %v1617_v52  ;;  %v1685_v13 = vld [vmem:[%s2897_s10] sm:$0xff] }
 0x649   : > { %v1626_v24 = vsel %vm1623_vm13, %v1625_v8, %v1621_v23  ;;  %1711 = vmatpush.msra.mxu2 %v1685_v13 }
 0x64a   : > { %v1627_v25 = vmul.f32 %v1626_v24, %v1602_v22 }
 0x64c   : > { %v2081_v27 = vclamps-f32 %v1627_v25, 1.0 }
 0x64e   : > { %v1630_v29 = vadd.f32 1.0, %v2081_v27 }
 0x650   : > { %v2751_v32 = vmul.f32 %v1630_v29, %v1588_v28 }
 0x652   : > { %v1636_v51 = vmul.f32 %v2203_v30, %v2751_v32 }
 0x654   : > { %v1637_v35 = vsel %vm959_vm0, %v1636_v51, 0.0 }
 0x655   : > { %1638 = vadd.xlane.f32.xlu2 %v1637_v35 }
 0x65d   : > { %1558 = vadd.xlane.f32.xlu2 %v1557_v37 }
 0x6c8   : > { %v1639_v38 = vpop.xlane.xlu2 %1638 }
 0x6c9   : > { %v2760_v39 = vmul.f32 0.17677669, %v1639_v38 }
 0x6cb   : > { %v1641_v40 = vmul.f32 %v2760_v39, %v2760_v39 }
 0x6cd   : > { %v1642_v41 = vrot.slane %v1641_v40, 4 }
 0x6cf   : > { %v1643_v42 = vadd.f32 %v1642_v41, %v1641_v40 }
 0x6d0   : > { %v1559_v43 = vpop.xlane.xlu2 %1558 }
 0x6d1   : > { %v1644_v44 = vrot.slane %v1643_v42, 2  ;;  %2252 = vrsqrt.f32 %v1559_v43  ;;  %vm1567_vm14 = vcmp.eq.f32.partialorder %v1559_v43, inf  ;;  %v1570_v1 = vand.u32 2147483648, %v1559_v43 }
 0x6d2   : > { %vm1569_vm15 = vcmp.eq.f32.partialorder %v1559_v43, 0.0 }
 0x6d3   : > { %v1645_v45 = vadd.f32 %v1644_v44, %v1643_v42 }
 0x6d5   : > { %v1646_v46 = vrot.slane %v1645_v45, 1 }
 0x6d7   : > { %v2253_v47 = vpop.eup %2252  ;;  %v1647_v48 = vadd.f32 %v1646_v46, %v1645_v45 }
 0x6d8   : > { %v1561_v49 = vmul.f32 %v2253_v47, %v1559_v43 }
 0x6d9   : > { %2254 = vrsqrt.f32 %v1647_v48  ;;  %vm1655_vm1 = vcmp.eq.f32.partialorder %v1647_v48, inf  ;;  %v1658_v0 = vand.u32 2147483648, %v1647_v48  ;;  %vm1657_vm2 = vcmp.eq.f32.partialorder %v1647_v48, 0.0 }
 0x6da   : > { %v1562_v50 = vmul.f32 %v2253_v47, %v1561_v49 }
 0x6dc   : > { %v1563_v53 = vmul.f32 0.5, %v1562_v50 }
 0x6de   : > { %v1564_v54 = vsub.f32 1.5, %v1563_v53 }
 0x6df   : > { %v2255_v4 = vpop.eup %2254 }
 0x6e0   : > { %v1649_v56 = vmul.f32 %v2255_v4, %v1647_v48  ;;  %v1565_v57 = vmul.f32 %v2253_v47, %v1564_v54  ;;  %v1726_v47 = vpop.xlane.xlu1 %1725  ;;  %v1750_v54 = vld [vmem:[%s2898_s18 + $0x8] sm:$0xff] }
 0x6e1   : > { %1774 = vmatpush.msrb.mxu0 %v1750_v54 }
 0x6e2   : > { %v1650_v58 = vmul.f32 %v2255_v4, %v1649_v56  ;;  %v1566_v59 = vmul.f32 %v1565_v57, %v1559_v43 }
 0x6e4   : > { %v1651_v60 = vmul.f32 0.5, %v1650_v58  ;;  %v1568_v62 = vsel %vm1567_vm14, %v1559_v43, %v1566_v59 }
 0x6e5   : > { %v1571_v3 = vsel %vm1569_vm15, %v1570_v1, %v1568_v62  ;;  %v2204_v62 = vld [vmem:[%s2900_s7] ss:$0 sm:$0xff]  ;;  %s2907_s7 = sld [smem:[#allocation26_spill]] }
 0x6e6   : > { %v1652_v61 = vsub.f32 1.5, %v1651_v60  ;;  %v1572_v7 = vmax.f32 %v1571_v3, 1e-12  ;;  %v2206_v1 = vld [vmem:[%s2901_s3] ss:$0 sm:$0xff]  ;;  %s2905_s3 = sld [smem:[#allocation24_spill]] }
 0x6e8   : > { %v1653_v63 = vmul.f32 %v2255_v4, %v1652_v61  ;;  %v1584_v36 = vand.u32 2147483648, %v1572_v7  ;;  %vm1578_vm8 = vweird.f32 %v1572_v7  ;;  %v1582_v38 = vand.u32 2147483647, %v1572_v7  ;;  %v1749_v4 = vld [vmem:[%s2898_s18] sm:$0xff] }
 0x6e9   : > { %1775 = vmatpush.msrb.mxu0 %v1749_v4  ;;  %v2205_v61 = vld [vmem:[%s2899_s1] ss:$0 sm:$0xff]  ;;  %s2906_s1 = sld [smem:[#allocation27_spill]] }
 0x6ea   : > { %v1654_v2 = vmul.f32 %v1653_v63, %v1647_v48  ;;  %v1585_v42 = vor.u32 1.1754944e-38, %v1584_v36  ;;  %vm1583_vm10 = vcmp.eq.f32.partialorder %v1582_v38, 8.507059e+37 }
 0x6eb   : > { %v2210_v36 = vld [vmem:[%s2907_s7] ss:$0 sm:$0xff]  ;;  %s2087_s7 = sshll.u32 %s2568_s0, 3 }
 0x6ec   : > { %v1656_v5 = vsel %vm1655_vm1, %v1647_v48, %v1654_v2  ;;  %v1727_v48 = vmul.f32 %v1726_v47, %v2717_v55 }
 0x6ed   : > { %v1659_v6 = vsel %vm1657_vm2, %v1658_v0, %v1656_v5 }
 0x6ee   : > { %v1660_v9 = vmax.f32 %v1659_v6, 1e-12  ;;  %v1728_v49 = vadd.f32 1e-12, %v1727_v48  ;;  %v2207_v6 = vld [vmem:[%s2902_s5] ss:$0 sm:$0xff] }
 0x6ef   : > { %s2904_s5 = sld [smem:[#allocation23_spill]]  ;;  %v1901_v38 = vld [vmem:[%s2906_s1 + $0x68] sm:$0xff]  ;;  %v1896_v47 = vld [vmem:[%s2906_s1 + $0x40] sm:$0xff]  ;;  %v1894_v4 = vld [vmem:[%s2906_s1 + $0x30] sm:$0xff] }
 0x6f0   : > { %2256 = vrcp.f32 %v1660_v9  ;;  %v1672_v21 = vand.u32 2147483648, %v1660_v9  ;;  %v1670_v22 = vand.u32 2147483647, %v1660_v9  ;;  %vm1666_vm4 = vweird.f32 %v1660_v9 }
 0x6f1   : > { %2258 = vrcp.f32 %v1572_v7  ;;  %vm1735_vm12 = vweird.f32 %v1728_v49 }
 0x6f2   : > { %v1673_v24 = vor.u32 1.1754944e-38, %v1672_v21  ;;  %vm1671_vm6 = vcmp.eq.f32.partialorder %v1670_v22, 8.507059e+37  ;;  %2260 = vrsqrt.f32 %v1728_v49 }
 0x6f6   : > { %v2257_v16 = vpop.eup %2256 }
 0x6f7   : > { %v2259_v17 = vpop.eup %2258  ;;  %v1662_v18 = vmul.f32 %v2257_v16, %v1660_v9  ;;  %vm1667_vm3 = vweird.f32 %v2257_v16 }
 0x6f8   : > { %v1574_v52 = vmul.f32 %v2259_v17, %v1572_v7  ;;  %vm1668_vm5 = vmor %vm1666_vm4, %vm1667_vm3  ;;  %vm1579_vm7 = vweird.f32 %v2259_v17  ;;  %v2261_v50 = vpop.eup %2260 }
 0x6f9   : > { %v1663_v19 = vsub.f32 1.0, %v1662_v18  ;;  %vm1580_vm9 = vmor %vm1578_vm8, %vm1579_vm7  ;;  %v1730_v53 = vmul.f32 %v2261_v50, %v1728_v49  ;;  %vm1736_vm11 = vweird.f32 %v2261_v50  ;;  %v1814_v18 = vld [vmem:[%s2903_s8 + $0x8] sm:$0xff] }
 0x6fa   : > { %v1575_v25 = vsub.f32 1.0, %v1574_v52  ;;  %vm1737_vm13 = vmor %vm1735_vm12, %vm1736_vm11 }
 0x6fb   : > { %v1664_v8 = vmul.f32 %v2257_v16, %v1663_v19  ;;  %v1731_v56 = vmul.f32 %v2261_v50, %v1730_v53  ;;  %v1813_v19 = vld [vmem:[%s2903_s8] sm:$0xff] }
 0x6fc   : > { %v1576_v30 = vmul.f32 %v2259_v17, %v1575_v25 }
 0x6fd   : > { %v1665_v23 = vadd.f32 %v2257_v16, %v1664_v8  ;;  %v1732_v57 = vmul.f32 0.5, %v1731_v56 }
 0x6fe   : > { %v1577_v35 = vadd.f32 %v2259_v17, %v1576_v30 }
 0x6ff   : > { %v1669_v27 = vsel %vm1668_vm5, %v2257_v16, %v1665_v23  ;;  %v1816_v16 = vld [vmem:[%s2903_s8 + $0x18] sm:$0xff] }
 0x700   : > { %v1674_v28 = vsel %vm1671_vm6, %v1673_v24, %v1669_v27  ;;  %v1581_v41 = vsel %vm1580_vm9, %v2259_v17, %v1577_v35  ;;  %v1815_v17 = vld [vmem:[%s2903_s8 + $0x10] sm:$0xff]  ;;  %1836 = vmatpush.msrb.mxu1 %v1816_v16  ;;  %v1903_v35 = vld [vmem:[%s2906_s1 + $0x78] sm:$0xff] }
 0x701   : > { %v1675_v29 = vmul.f32 %v1674_v28, %v2760_v39  ;;  %v1586_v39 = vsel %vm1583_vm10, %v1585_v42, %v1581_v41  ;;  %v2208_v28 = vld [vmem:[%s2904_s5] ss:$0 sm:$0xff]  ;;  %1908 = vmatpush.msra.mxu3 %v1903_v35  ;;  %s947_s5 = sand.u32 1, %s2322_s23  }
 0x702   : > { %v1587_v45 = vmul.f32 %v1586_v39, %v2754_v34  ;;  %v1733_v34 = vsub.f32 1.5, %v1732_v57  ;;  %1837 = vmatpush.msrb.mxu1 %v1815_v17  ;;  %v1900_v41 = vld [vmem:[%s2906_s1 + $0x60] sm:$0xff]  ;;  %s1963_s0 = scalar_lea.sflag [#allocation7], %s947_s5 }
 0x703   : > { %v1676_v31 = vmul.f32 %v1675_v29, %v2751_v32 }
 0x704   : > { %v1734_v58 = vmul.f32 %v2261_v50, %v1733_v34  ;;  %1838 = vmatpush.msrb.mxu1 %v1814_v18  ;;  %v1893_v34 = vld [vmem:[%s2906_s1 + $0x28] sm:$0xff] }
 0x705   : > { %v1677_v33 = vsel %vm959_vm0, %v1676_v31, 0.0  ;;  %v2209_v31 = vld [vmem:[%s2905_s3] ss:$0 sm:$0xff]  ;;  %s2072_s3 = sshll.u32 %s947_s5, 3 }
 0x706   : > { %v1678_v51 = vrot.slane %v1677_v33, 4  ;;  %v1738_v59 = vsel %vm1737_vm13, %v2261_v50, %v1734_v58  ;;  %1839 = vmatpush.msrb.mxu1 %v1813_v19  ;;  %v1895_v50 = vld [vmem:[%s2906_s1 + $0x38] sm:$0xff]  ;;  %s949_s8 = scalar_lea.vmem [#allocation6], %s2072_s3 }
 0x707   : > { %v1739_v60 = vmul.f32 %v1738_v59, %v2743_v26  ;;  %s1975_s9 = sshll.u32 %s949_s8, 4  ;;  %s1976_s9 = int_to_ptr.vmem [resolvable:$true] %s1975_s9 }
 0x708   : > { %v1679_v37 = vadd.f32 %v1678_v51, %v1677_v33 }
 0x709   : > { %v1743_v63 = vmul.f32 %v2205_v61, %v1739_v60  ;;  %v1892_v60 = vld [vmem:[%s2906_s1 + $0x20] sm:$0xff] }
 0x70a   : > { %v1680_v40 = vrot.slane %v1679_v37, 2 }
 0x70b   : > { %v1747_v0 = vadd.f32 %v2206_v1, %v1743_v63 }
 0x70c   : > { %v1681_v43 = vadd.f32 %v1680_v40, %v1679_v37  ;;  %v1902_v37 = vld [vmem:[%s2906_s1 + $0x70] sm:$0xff] }
 0x70d   : > { %1909 = vmatpush.msra.mxu3 %v1902_v37 }
 0x70e   : > { %v1682_v44 = vrot.slane %v1681_v43, 1 }
 0x70f   : > { %1910 = vmatpush.msra.mxu3 %v1901_v38 }
 0x710   : > { %v1683_v32 = vadd.f32 %v1682_v44, %v1681_v43  ;;  %v1899_v43 = vld [vmem:[%s2906_s1 + $0x58] sm:$0xff]  ;;  %v1898_v44 = vld [vmem:[%s2906_s1 + $0x50] sm:$0xff] }
 0x711   : > { %1911 = vmatpush.msra.mxu3 %v1900_v41 }
 0x712   : > { %v1684_v46 = vmul.f32 %v1683_v32, %v1587_v45  ;;  %v1897_v45 = vld [vmem:[%s2906_s1 + $0x48] sm:$0xff] }
 0x713   : > { %1912 = vmatpush.msra.mxu3 %v1899_v43 }
 0x714   : > { %2082 = vmatmul.msk.f32.vlgmr.msra.gmra.mxu2 %vm959_vm0, %v1684_v46 }
 0x715   : > { %1913 = vmatpush.msra.mxu3 %v1898_v44 }
 0x717   : > { %1914 = vmatpush.msra.mxu3 %v1897_v45 }
 0x719   : > { %1915 = vmatpush.msra.mxu3 %v1896_v47 }
 0x71b   : > { %1916 = vmatpush.msra.mxu3 %v1895_v50  ;;  %v2213_v50 = vld [vmem:[%s2540_s6] ss:$0 sm:$0xff] }
 0x71d   : > { %1917 = vmatpush.msra.mxu3 %v1894_v4 }
 0x71f   : > { %1918 = vmatpush.msra.mxu3 %v1893_v34 }
 0x721   : > { %1919 = vmatpush.msra.mxu3 %v1892_v60 }
 0x797   : > { %v1713_v2 = vpop.f32.mrf.mxu2 }
 0x798   : > { %v1714_v3 = vadd.f32 %v2204_v62, %v1713_v2  ;;  %v1891_v62 = vld [vmem:[%s2906_s1 + $0x18] sm:$0xff]  ;;  %v1890_v2 = vld [vmem:[%s2906_s1 + $0x10] sm:$0xff] }
 0x799   : > { %1920 = vmatpush.msra.mxu3 %v1891_v62 }
 0x79a   : > { %v1748_v5 = vmul.f32 %v1747_v0, %v1714_v3  ;;  %v1889_v0 = vld [vmem:[%s2906_s1 + $0x8] sm:$0xff] }
 0x79b   : > { %1921 = vmatpush.msra.mxu3 %v1890_v2 }
 0x79c   : > { %2083 = vmatmul.msk.f32.vlgmr.msrb.gmra.mxu0 %vm959_vm0, %v1748_v5 }
 0x79d   : > { %1922 = vmatpush.msra.mxu3 %v1889_v0 }
 0x819   : > { %v1777_v7 = vpop.f32.mrf.mxu0 }
 0x81a   : > { %v1778_v9 = vadd.f32 %v2207_v6, %v1777_v7  ;;  %v1888_v7 = vld [vmem:[%s2906_s1] sm:$0xff]  ;;  %s1973_s1 = scalar_lea.hbm %s2545_s20, %s2087_s7  ;;  %s2288_s7 = scalar_lea.hbm %s2545_s20, 16 }
 0x81b   : > { %1923 = vmatpush.msra.mxu3 %v1888_v7  ;;  %s1977_s10 = sshll.u32 %s1973_s1, 4  ;;  %s1978_s10 = int_to_ptr.hbm [resolvable:$true] %s1977_s10 }
 0x81c   : > { %v1780_v10 = vadd.f32 %v1778_v9, %v2732_v20  ;;  %s2282_s12 = sshra.s32 %s1978_s10, 4  ;;  %s2283_s12 = int_to_ptr.hbm [resolvable:$true] %s2282_s12 }
 0x81d   : > { %p2289_p0 = scmp.lt.s32.totalorder %s2283_s12, %s2545_s20 }
 0x81e   : > { %v1783_v26 = vsel %vm959_vm0, %v1780_v10, 0.0 }
 0x81f   : > { %1784 = vadd.xlane.f32.xlu2 %v1783_v26 }
 0x892   : > { %v1785_v11 = vpop.xlane.xlu2 %1784 }
 0x893   : > { %v1786_v12 = vmul.f32 %v1785_v11, %v2717_v55 }
 0x895   : > { %v1787_v13 = vsub.f32 %v1780_v10, %v1786_v12 }
 0x897   : > { %v1788_v14 = vmul.f32 %v1787_v13, %v1787_v13 }
 0x899   : > { %v1789_v15 = vsel %vm959_vm0, %v1788_v14, 0.0 }
 0x89a   : > { %1790 = vadd.xlane.f32.xlu0 %v1789_v15 }
 0x90d   : > { %v1791_v20 = vpop.xlane.xlu0 %1790 }
 0x90e   : > { %v1792_v21 = vmul.f32 %v1791_v20, %v2717_v55 }
 0x910   : > { %v1793_v52 = vadd.f32 1e-12, %v1792_v21 }
 0x912   : > { %2262 = vrsqrt.f32 %v1793_v52  ;;  %vm1800_vm15 = vweird.f32 %v1793_v52 }
 0x918   : > { %v2263_v8 = vpop.eup %2262 }
 0x919   : > { %v1795_v22 = vmul.f32 %v2263_v8, %v1793_v52  ;;  %vm1801_vm14 = vweird.f32 %v2263_v8 }
 0x91a   : > { %vm1802_vm1 = vmor %vm1800_vm15, %vm1801_vm14 }
 0x91b   : > { %v1796_v23 = vmul.f32 %v2263_v8, %v1795_v22 }
 0x91d   : > { %v1797_v24 = vmul.f32 0.5, %v1796_v23 }
 0x91f   : > { %v1798_v25 = vsub.f32 1.5, %v1797_v24 }
 0x921   : > { %v1799_v27 = vmul.f32 %v2263_v8, %v1798_v25 }
 0x923   : > { %v1803_v29 = vsel %vm1802_vm1, %v2263_v8, %v1799_v27 }
 0x924   : > { %v1804_v30 = vmul.f32 %v1803_v29, %v1787_v13  ;;  %v2211_v29 = vld [vmem:[%s2530_s27] ss:$0 sm:$0xff] }
 0x926   : > { %v1808_v33 = vmul.f32 %v2208_v28, %v1804_v30 }
 0x928   : > { %v2795_v51 = vadd.f32 %v2209_v31, %v1808_v33 }
 0x92a   : > { %2084 = vmatmul.msk.f32.vlgmr.msrb.gmra.mxu1 %vm959_vm0, %v2795_v51 }
 0x9a7   : > { %v1841_v40 = vpop.f32.mrf.mxu1 }
 0x9a8   : > { %v2804_v42 = vadd.f32 %v2210_v36, %v1841_v40 }
 0x9aa   : > { %v1845_v39 = vmul.f32 0.70710677, %v2804_v42  ;;  %v1844_v25 = vmul.f32 0.5, %v2804_v42 }
 0x9ac   : > { %v1846_v32 = vmul.f32 %v1845_v39, %v1845_v39 }
 0x9ae   : > { %v1847_v46 = vmin.f32 %v1846_v32, 16.0 }
 0x9b0   : > { %v1848_v48 = vmul.f32 2.1237322e-06, %v1847_v46  ;;  %v1859_v49 = vmul.f32 3.8918573e-05, %v1847_v46 }
 0x9b2   : > { %v1849_v53 = vadd.f32 0.00028619796, %v1848_v48  ;;  %v1860_v54 = vadd.f32 0.001143296, %v1859_v49  ;;  %v2212_v48 = vld [vmem:[%s2908_s4] ss:$0 sm:$0xff] }
 0x9b3   : > { %s2284_s4 = scalar_lea.hbm %s2283_s12, 8 }
 0x9b4   : > { %v1850_v56 = vmul.f32 %v1849_v53, %v1847_v46  ;;  %v1861_v57 = vmul.f32 %v1860_v54, %v1847_v46  ;;  %p2285_p11 = scmp.ne.s32.totalorder %s2283_s12, %s2284_s4  ;;  %p2290_p1 = scmp.lt.s32.totalorder %s2288_s7, %s2284_s4 }
 0x9b6   : > { %v1862_v58 = vadd.f32 0.014752088, %v1861_v57  ;;  %v1851_v59 = vadd.f32 0.0036580483, %v1850_v56  ;;  %p2286_p12 = pnand %p2285_p11, %p2585_p5  ;;  %p2291_p2 = por %p2290_p1, %p2289_p0 }
 0x9b8   : > { %v1863_v61 = vmul.f32 %v1862_v58, %v1847_v46  ;;  %v1852_v1 = vmul.f32 %v1851_v59, %v1847_v46  ;;  %p2287_p13 = pneg %p2286_p12 }
 0x9ba   : > { %v1864_v63 = vadd.f32 0.112945676, %v1863_v61  ;;  %v1853_v6 = vadd.f32 0.05243302, %v1852_v1  ;;  %p2292_p3 = pnand %p2291_p2, %p2287_p13 }
 0x9bc   : > { %v1865_v3 = vmul.f32 %v1864_v63, %v1847_v46  ;;  %v1854_v26 = vmul.f32 %v1853_v6, %v1847_v46 }
 0x9be   : > { %v1866_v5 = vadd.f32 0.4994258, %v1865_v3  ;;  %v1855_v11 = vadd.f32 0.18741608, %v1854_v26 }
 0x9c0   : > { %v1867_v9 = vmul.f32 %v1866_v5, %v1847_v46  ;;  %v1856_v13 = vmul.f32 %v1855_v11, %v1847_v46 }
 0x9c2   : > { %v1868_v10 = vadd.f32 1.0, %v1867_v9  ;;  %v1857_v17 = vadd.f32 1.1283791, %v1856_v13 }
 0x9c4   : > { %2264 = vrcp.f32 %v1868_v10  ;;  %v1880_v16 = vand.u32 2147483648, %v1868_v10  ;;  %v1878_v19 = vand.u32 2147483647, %v1868_v10  ;;  %vm1874_vm3 = vweird.f32 %v1868_v10 }
 0x9c5   : > { %v1858_v52 = vmul.f32 %v1857_v17, %v1845_v39 }
 0x9c6   : > { %v1881_v21 = vor.u32 1.1754944e-38, %v1880_v16  ;;  %vm1879_vm5 = vcmp.eq.f32.partialorder %v1878_v19, 8.507059e+37 }
 0x9ca   : > { %v2265_v12 = vpop.eup %2264 }
 0x9cb   : > { %v1870_v14 = vmul.f32 %v2265_v12, %v1868_v10  ;;  %vm1875_vm2 = vweird.f32 %v2265_v12 }
 0x9cc   : > { %vm1876_vm4 = vmor %vm1874_vm3, %vm1875_vm2 }
 0x9cd   : > { %v1871_v15 = vsub.f32 1.0, %v1870_v14 }
 0x9cf   : > { %v1872_v18 = vmul.f32 %v2265_v12, %v1871_v15 }
 0x9d1   : > { %v1873_v20 = vadd.f32 %v2265_v12, %v1872_v18 }
 0x9d3   : > { %v1877_v8 = vsel %vm1876_vm4, %v2265_v12, %v1873_v20 }
 0x9d4   : > { %v1882_v22 = vsel %vm1879_vm5, %v1881_v21, %v1877_v8 }
 0x9d5   : > { %v1883_v23 = vmul.f32 %v1882_v22, %v1858_v52 }
 0x9d7   : > { %v2085_v24 = vclamps-f32 %v1883_v23, 1.0 }
 0x9d9   : > { %v1886_v27 = vadd.f32 1.0, %v2085_v24 }
 0x9db   : > { %v1887_v28 = vmul.f32 %v1886_v27, %v1844_v25 }
 0x9dd   : > { %1924 = vmatmul.f32.vlgmr.msra.gmra.mxu3 %v1887_v28 }
 0xa60   : > { %v1925_v30 = vpop.f32.mrf.mxu3 }
 0xa61   : > { %v1926_v31 = vadd.f32 %v2211_v29, %v1925_v30 }
 0xa63   : > { %v1928_v33 = vadd.f32 %v1926_v31, %v2795_v51 }
 0xa65   : > { %v1931_v35 = vsel %vm959_vm0, %v1928_v33, 0.0 }
 0xa66   : > { %1932 = vadd.xlane.f32.xlu1 %v1931_v35 }
 0xad9   : > { %v1933_v36 = vpop.xlane.xlu1 %1932 }
 0xada   : > { %v1934_v37 = vmul.f32 %v1933_v36, %v2717_v55 }
 0xadc   : > { %v1935_v38 = vsub.f32 %v1928_v33, %v1934_v37 }
 0xade   : > { %v1936_v40 = vmul.f32 %v1935_v38, %v1935_v38 }
 0xae0   : > { %v1937_v41 = vsel %vm959_vm0, %v1936_v40, 0.0 }
 0xae1   : > { %1938 = vadd.xlane.f32.xlu2 %v1937_v41 }
 0xb54   : > { %v1939_v42 = vpop.xlane.xlu2 %1938 }
 0xb55   : > { %v1940_v43 = vmul.f32 %v1939_v42, %v2717_v55 }
 0xb57   : > { %v1941_v39 = vadd.f32 1e-12, %v1940_v43 }
 0xb59   : > { %2266 = vrsqrt.f32 %v1941_v39  ;;  %vm1948_vm7 = vweird.f32 %v1941_v39 }
 0xb5f   : > { %v2267_v51 = vpop.eup %2266 }
 0xb60   : > { %v1943_v44 = vmul.f32 %v2267_v51, %v1941_v39  ;;  %vm1949_vm6 = vweird.f32 %v2267_v51 }
 0xb61   : > { %vm1950_vm8 = vmor %vm1948_vm7, %vm1949_vm6 }
 0xb62   : > { %v1944_v32 = vmul.f32 %v2267_v51, %v1943_v44 }
 0xb64   : > { %v1945_v45 = vmul.f32 0.5, %v1944_v32 }
 0xb66   : > { %v1946_v46 = vsub.f32 1.5, %v1945_v45 }
 0xb68   : > { %v1947_v47 = vmul.f32 %v2267_v51, %v1946_v46 }
 0xb6a   : > { %v1951_v49 = vsel %vm1950_vm8, %v2267_v51, %v1947_v47 }
 0xb6b   : > { %v1952_v55 = vmul.f32 %v1951_v49, %v1935_v38 }
 0xb6d   : > { %v1956_v53 = vmul.f32 %v2212_v48, %v1952_v55 }
 0xb6f   : > { %v1960_v54 = vadd.f32 %v2213_v50, %v1956_v53 }
 0xb71   : > { %1961 = vst.msk [vmem:[%s949_s8] sm:$0xff] %vm959_vm0, %v1960_v54 }
 0xb72   : > { %2295 = shalt.err (!%p2292_p3)
}
 0xb73   : > { %2090 = dma.vmem_to_hbm [thread:$0]  (%p2585_p5), %s1976_s9, 128, %s1978_s10, %s1963_s0  }
 0xb74 PF: > { %p2096_p4 = scmp.ge.s32.totalorder %s2330_s28, 2  ;;  %s1989_s8 = sand.u32 1, %s2318_s22  }
 0xb75   : > { %s1990_s1 = scalar_lea.sflag [#allocation7], %s1989_s8 }
 0xb76   : > { %p2093_p7 = pnand %p2096_p4, %p2589_p6 }
 0xb78   : > { %p2094_p8 = pneg %p2093_p7 }
 0xb7a   : > { %2313 = dma.done.wait (%p2094_p8), %s1990_s1, 128  }
 0xb7b   : > { %2315 = vsyncadd (%p2094_p8), %s1990_s1, 4294967168  ;;  %p73_p9 = scmp.ge.s32.totalorder %s2572_s2, 4   ;;  %s2909_s22 = smov %s2322_s23 }
 0xb7c   : > { %s2910_s23 = smov %s2326_s26  ;;  %s2911_s26 = smov %s2583_s11 }
 0xb7d   : > { %s2912_s28 = smov %s2572_s2  ;;  %75 = sbr.rel (!%p73_p9) target bundleno = 63 (0x3f), region = 231 }
 0xb82   :  { %1996 = vsyncpa [#allocation7], 1 }
 0xb83   :  { %1998 = vsyncpa [#allocation7 + $0x1], 1 }

</bundles_post_ra>
